<compile_context>
chip_gen: v5e
topology: v5e:2x2
jax: 0.10.0
libtpu: 0.0.40
codegen_flags: <defaults>
</compile_context>

<pallas_src>
import functools

import jax
import jax.numpy as jnp
from jax import lax
from jax.experimental import pallas as pl
from jax.experimental.pallas import tpu as pltpu


# ---------------------------------------------------------------------------
# Small helpers (hardware-aware sizing)
# ---------------------------------------------------------------------------
def _pick_chunk(total, align, target):
    """Largest multiple of `align` that divides `total` and is <= target; else `total`."""
    best = None
    c = align
    while c <= min(total, target):
        if total % c == 0:
            best = c
        c += align
    return best if best is not None else total


def _vmem_capacity_bytes():
    try:
        cap = getattr(pltpu.get_tpu_info(), "vmem_capacity_bytes", None)
        if cap:
            return int(cap)
    except Exception:
        pass
    return 64 * 1024 * 1024  # conservative default (v7x-sized VMEM)


def _supports_bf16_valu():
    """v6e / v7x have a native bf16 VALU; v5e and older do not."""
    try:
        kind = jax.devices()[0].device_kind.lower()
    except Exception:
        return False
    return ("v6" in kind) or ("v7" in kind) or ("7x" in kind)


def _residency_budget(vmem_capacity):
    # Keep the pooling kernel's resident working set (double-buffered feature
    # block + accumulator + interpolation-matrix temporaries) to ~1/4 of
    # physical VMEM: ~32 MiB on v5e/v6e (128 MiB), ~16 MiB on v7x (64 MiB).
    return min(vmem_capacity // 4, 32 * 1024 * 1024)


def _select_hw_chunk(C, HW_pad, S, budget):
    per_pos = 4 * C + 8 * S      # 2x bf16 feature col (double buffer) + ~2 f32 (pos,S) temporaries
    fixed = C * S * 4            # f32 accumulator
    if fixed + per_pos * HW_pad <= budget:
        # Whole (padded) map resident: with ROIs sorted by batch index the
        # feature block index repeats across consecutive grid steps and Pallas
        # skips the re-DMA -> per-image (not per-ROI) HBM feature traffic.
        return HW_pad
    max_chunk = max(128, (budget - fixed) // per_pos)
    return _pick_chunk(HW_pad, 128, min(max_chunk, 8192))


def _vmem_limit_bytes(est, cap):
    return int(min(max(2 * est, 32 * 1024 * 1024), (cap * 3) // 4))


# ---------------------------------------------------------------------------
# Deformable PSROI pooling kernel: grid = (ROI, HW-chunk), chunk axis last.
# ---------------------------------------------------------------------------
def _psroi_kernel(bidx_ref, rois_ref, x_ref, off_ref, mask_ref, pool_ref,
                  out_ref, acc_ref, *, spatial_scale, pooled_size,
                  sample_per_part, trans_std, height, width, hw_chunk, mt_bf16):
    del bidx_ref  # only consumed by the feature index_map
    i = pl.program_id(0)            # ROI index
    j = pl.program_id(1)            # flattened-HW chunk index
    H, W = height, width
    CH = hw_chunk
    ps = pooled_size
    spp = sample_per_part
    spp2 = spp * spp
    nbins = ps * ps
    S = nbins * spp2
    f32 = jnp.float32

    @pl.when(j == 0)
    def _():
        acc_ref[...] = jnp.zeros_like(acc_ref)

    # --- per-ROI scalars, kept as (1,1) vectors so the math stays on the VPU.
    # rois are stored transposed (5, n) in SMEM to avoid 16x padding blow-up.
    rx1 = jnp.full((1, 1), rois_ref[1, i], dtype=f32)
    ry1 = jnp.full((1, 1), rois_ref[2, i], dtype=f32)
    rx2 = jnp.full((1, 1), rois_ref[3, i], dtype=f32)
    ry2 = jnp.full((1, 1), rois_ref[4, i], dtype=f32)
    # TODO(synk): round() emulated as floor(x+0.5); differs from PyTorch's
    # round-half-away-from-zero for negative ROI coordinates.
    roi_start_w = jnp.floor(rx1 + 0.5) * spatial_scale - 0.5
    roi_start_h = jnp.floor(ry1 + 0.5) * spatial_scale - 0.5
    roi_end_w = (jnp.floor(rx2 + 0.5) + 1.0) * spatial_scale - 0.5
    roi_end_h = (jnp.floor(ry2 + 0.5) + 1.0) * spatial_scale - 0.5
    roi_width = jnp.maximum(roi_end_w - roi_start_w, 0.1)
    roi_height = jnp.maximum(roi_end_h - roi_start_h, 0.1)
    bin_size_w = roi_width / ps
    bin_size_h = roi_height / ps
    sub_bin_w = bin_size_w / spp
    sub_bin_h = bin_size_h / spp

    # --- per-sample (1, S) quantities; sample order is bin-major:
    #     s = (ph*ps + pw)*spp2 + ih*spp + iw
    # Index decomposition in f32 (small exact integers) avoids vector int div.
    s_idx = lax.broadcasted_iota(jnp.int32, (1, S), 1).astype(f32)
    bin_idx = jnp.floor(s_idx / spp2)
    within = s_idx - bin_idx * spp2
    ph = jnp.floor(bin_idx / ps)
    pw = bin_idx - ph * ps
    ih = jnp.floor(within / spp)
    iw = within - ih * spp

    off = off_ref[0]                        # (2, S) per-sample trans offsets
    tx = off[0:1, :] * trans_std
    ty = off[1:2, :] * trans_std

    wstart = pw * bin_size_w + roi_start_w + tx * roi_width
    hstart = ph * bin_size_h + roi_start_h + ty * roi_height
    w = wstart + iw * sub_bin_w             # (1, S) sample x-coords
    h = hstart + ih * sub_bin_h             # (1, S) sample y-coords

    valid = jnp.logical_not(
        (w < -0.5) | (w > (W - 0.5)) | (h < -0.5) | (h > (H - 0.5)))
    validf = valid.astype(f32)
    wc = jnp.clip(w, 0.0, W - 1.0)
    hc = jnp.clip(h, 0.0, H - 1.0)
    x1 = jnp.floor(wc)
    x2 = jnp.ceil(wc)
    y1 = jnp.floor(hc)
    y2 = jnp.ceil(hc)
    dx = wc - x1
    dy = hc - y1

    # --- interpolation matrix mt (CH, S): bilinear weight of each spatial
    # position of this chunk for each sample.  Weight factorizes as
    # wy(row)*wx(col), so build two small matrices and take their outer
    # product.  Positions beyond H*W (HW padding) land on rows >= H and get
    # zero weight automatically, so padding never changes results.
    cd = x_ref.dtype if mt_bf16 else f32
    if CH % W == 0 and W % 8 == 0:
        n_rows = CH // W
        row0 = j * n_rows
        rowp = (row0 + lax.broadcasted_iota(jnp.int32, (n_rows, S), 0)).astype(f32)
        wy = (jnp.where(rowp == y1, 1.0 - dy, 0.0) +
              jnp.where(rowp == y2, dy, 0.0))                      # (n_rows, S)
        colp = lax.broadcasted_iota(jnp.int32, (W, S), 0).astype(f32)
        wx = (jnp.where(colp == x1, 1.0 - dx, 0.0) +
              jnp.where(colp == x2, dx, 0.0)) * validf             # (W, S)
        # Outer product in bf16 on v6e/v7x (bf16 VALU): removes the large
        # (CH, S) f32->bf16 cast and halves the mt temporary.
        mt = (wy.astype(cd)[:, None, :] * wx.astype(cd)[None, :, :]).reshape(CH, S)
    else:
        # Fallback: direct per-position construction (f32 compare/select on all
        # chips — v5e has no bf16 VALU; single cast at the matmul below).
        pos = (j * CH + lax.broadcasted_iota(jnp.int32, (CH, S), 0)).astype(f32)
        rowp = jnp.floor(pos / W)
        colp = pos - rowp * W
        wy = (jnp.where(rowp == y1, 1.0 - dy, 0.0) +
              jnp.where(rowp == y2, dy, 0.0))
        wx = (jnp.where(colp == x1, 1.0 - dx, 0.0) +
              jnp.where(colp == x2, dx, 0.0))
        mt = wy * wx * validf

    feat = x_ref[0]                                                # (C, CH) bf16
    acc_ref[...] += jnp.dot(feat, mt.astype(feat.dtype),
                            preferred_element_type=f32)            # (C, S)

    @pl.when(j == pl.num_programs(1) - 1)
    def _():
        # Average the spp*spp samples of each bin (counting only valid
        # samples), then apply the modulation mask.  The (S, nbins) one-hot is
        # a constant input loaded once (not rebuilt per ROI); validf is reused
        # from the matmul body above.
        pool = pool_ref[...]                                        # (S, nbins)
        bin_sum = jnp.dot(acc_ref[...], pool, preferred_element_type=jnp.float32)
        count = jnp.dot(validf, pool, preferred_element_type=jnp.float32)
        avg = jnp.where(count > 0.0, bin_sum / jnp.maximum(count, 1.0), 0.0)
        out_ref[0] = (avg * mask_ref[0]).astype(out_ref.dtype)


def dcn_v2_psroi_pooling(x_flat, rois, bidx, offset_s, mask, *, spatial_scale,
                         pooled_size, sample_per_part, trans_std, height, width,
                         hw_chunk=None):
    """x_flat: (B, C, H*W) features (bf16 recommended); rois: (n,5) f32;
    bidx: (n,) int32 (= rois[:,0]); offset_s: (n, 2, S) per-sample trans
    offsets; mask: (n, 1, nbins).  Returns (n, C, nbins) f32, bins in
    (ph, pw) row-major order."""
    n = rois.shape[0]
    B, C, HW_in = x_flat.shape
    assert HW_in >= height * width
    nbins = pooled_size * pooled_size
    spp2 = sample_per_part * sample_per_part
    S = nbins * spp2

    # Pad the flattened spatial axis to a multiple of 128 so chunking is always
    # possible (padded positions get zero bilinear weight in the kernel).
    HW_pad = -(-HW_in // 128) * 128
    if HW_pad != HW_in:
        x_flat = jnp.pad(x_flat, ((0, 0), (0, 0), (0, HW_pad - HW_in)))

    cap = _vmem_capacity_bytes()
    if hw_chunk is None:
        hw_chunk = _select_hw_chunk(C, HW_pad, S, _residency_budget(cap))
    assert HW_pad % hw_chunk == 0
    assert hw_chunk % 128 == 0 or hw_chunk == HW_pad
    n_chunks = HW_pad // hw_chunk

    # (5, n) SMEM layout: pads to [8, ceil(n/128)*128] words instead of
    # [ceil(n/8)*8, 128] for the (n, 5) layout.
    rois_t = jnp.transpose(rois.astype(jnp.float32))
    bidx = bidx.astype(jnp.int32)
    pool_mat = (jnp.arange(S, dtype=jnp.int32)[:, None] // spp2
                == jnp.arange(nbins, dtype=jnp.int32)[None, :]).astype(jnp.float32)

    kernel = functools.partial(
        _psroi_kernel,
        spatial_scale=float(spatial_scale),
        pooled_size=int(pooled_size),
        sample_per_part=int(sample_per_part),
        trans_std=float(trans_std),
        height=int(height), width=int(width), hw_chunk=int(hw_chunk),
        mt_bf16=_supports_bf16_valu())

    est = (2 * C * hw_chunk * 2            # double-buffered bf16 feature block
           + C * S * 4                     # f32 accumulator
           + 3 * hw_chunk * S * 4          # interpolation-matrix temporaries
           + 2 * (2 * S * 4 + nbins * 4 + C * nbins * 4)   # off/mask/out buffers
           + S * nbins * 4)                # pooling one-hot
    vmem_limit = _vmem_limit_bytes(est, cap)

    grid_spec = pltpu.PrefetchScalarGridSpec(
        num_scalar_prefetch=1,
        grid=(n, n_chunks),
        in_specs=[
            pl.BlockSpec(memory_space=pltpu.MemorySpace.SMEM),               # rois (5, n)
            pl.BlockSpec((1, C, hw_chunk), lambda i, j, b: (b[i], 0, j)),    # features
            pl.BlockSpec((1, 2, S), lambda i, j, b: (i, 0, 0)),              # offsets
            pl.BlockSpec((1, 1, nbins), lambda i, j, b: (i, 0, 0)),          # mask
            pl.BlockSpec((S, nbins), lambda i, j, b: (0, 0)),                # bin one-hot
        ],
        out_specs=pl.BlockSpec((1, C, nbins), lambda i, j, b: (i, 0, 0)),
        scratch_shapes=[pltpu.VMEM((C, S), jnp.float32)],
    )
    return pl.pallas_call(
        kernel,
        out_shape=jax.ShapeDtypeStruct((n, C, nbins), jnp.float32),
        grid_spec=grid_spec,
        compiler_params=pltpu.CompilerParams(
            dimension_semantics=("parallel", "arbitrary"),
            vmem_limit_bytes=vmem_limit),
    )(bidx, rois_t, x_flat, offset_s, mask, pool_mat)


# ---------------------------------------------------------------------------
# Offset/mask MLP kernel: Linear -> ReLU -> Linear -> ReLU -> Linear, first
# layer K-tiled with a VMEM f32 accumulator; bf16 operands, f32 accumulation;
# mask sigmoid fused; output lane-padded to 128 columns (unmasked stores).
# ---------------------------------------------------------------------------
def _fc_kernel(x_ref, w1_ref, b1_ref, w2_ref, b2_ref, w3_ref, b3_ref,
               o_ref, acc_ref, *, nbins):
    k = pl.program_id(1)

    @pl.when(k == 0)
    def _():
        acc_ref[...] = jnp.zeros_like(acc_ref)

    acc_ref[...] += jnp.dot(x_ref[...], w1_ref[...],
                            preferred_element_type=jnp.float32)

    @pl.when(k == pl.num_programs(1) - 1)
    def _():
        h1 = jnp.maximum(acc_ref[...] + b1_ref[...], 0.0)
        h2 = jnp.maximum(
            jnp.dot(h1.astype(w2_ref.dtype), w2_ref[...],
                    preferred_element_type=jnp.float32) + b2_ref[...], 0.0)
        z = (jnp.dot(h2.astype(w3_ref.dtype), w3_ref[...],
                     preferred_element_type=jnp.float32) + b3_ref[...])
        # fused epilogue: sigmoid only on the mask third; columns beyond
        # 3*nbins are zero-padding and are sliced away in the wrapper.
        lane = lax.broadcasted_iota(jnp.int32, z.shape, 1)
        is_mask = (lane >= 2 * nbins) & (lane < 3 * nbins)
        z = jnp.where(is_mask, jax.nn.sigmoid(z), z)
        o_ref[...] = z.astype(o_ref.dtype)


def offset_mask_fc(x, params, *, nbins):
    n, d_in = x.shape
    fc_dim = params["w1"].shape[1]
    d_out = 3 * nbins
    d_out_pad = max(128, -(-d_out // 128) * 128)

    # bf16 operands (MXU-native, halves weight/activation streaming); biases
    # and accumulation stay f32.
    xb = x.astype(jnp.bfloat16)
    w1 = params["w1"].astype(jnp.bfloat16)
    w2 = params["w2"].astype(jnp.bfloat16)
    w3, b3 = params["w3"], params["b3"]
    if w3.shape[1] != d_out_pad:
        w3 = jnp.pad(w3, ((0, 0), (0, d_out_pad - w3.shape[1])))
        b3 = jnp.pad(b3, ((0, 0), (0, d_out_pad - b3.shape[1])))
    w3 = w3.astype(jnp.bfloat16)

    tm = _pick_chunk(n, 8, 256)
    tk = _pick_chunk(d_in, 128, 2048)
    assert n % tm == 0 and d_in % tk == 0
    grid = (n // tm, d_in // tk)

    cap = _vmem_capacity_bytes()
    est = (2 * tm * tk * 2 + 2 * tk * fc_dim * 2 + 2 * fc_dim * fc_dim * 2
           + 2 * fc_dim * d_out_pad * 2 + tm * fc_dim * 4
           + 2 * tm * d_out_pad * 4 + 4 * tm * fc_dim * 4
           + 2 * (2 * fc_dim + d_out_pad) * 4)
    vmem_limit = _vmem_limit_bytes(est, cap)

    grid_spec = pltpu.PrefetchScalarGridSpec(
        num_scalar_prefetch=0,
        grid=grid,
        in_specs=[
            pl.BlockSpec((tm, tk), lambda i, k: (i, k)),              # x row/K tile
            pl.BlockSpec((tk, fc_dim), lambda i, k: (k, 0)),          # w1 K tile
            pl.BlockSpec((1, fc_dim), lambda i, k: (0, 0)),           # b1
            pl.BlockSpec((fc_dim, fc_dim), lambda i, k: (0, 0)),      # w2
            pl.BlockSpec((1, fc_dim), lambda i, k: (0, 0)),           # b2
            pl.BlockSpec((fc_dim, d_out_pad), lambda i, k: (0, 0)),   # w3 (padded)
            pl.BlockSpec((1, d_out_pad), lambda i, k: (0, 0)),        # b3 (padded)
        ],
        out_specs=pl.BlockSpec((tm, d_out_pad), lambda i, k: (i, 0)),
        scratch_shapes=[pltpu.VMEM((tm, fc_dim), jnp.float32)],
    )
    out = pl.pallas_call(
        functools.partial(_fc_kernel, nbins=nbins),
        out_shape=jax.ShapeDtypeStruct((n, d_out_pad), jnp.float32),
        grid_spec=grid_spec,
        compiler_params=pltpu.CompilerParams(
            dimension_semantics=("parallel", "arbitrary"),
            vmem_limit_bytes=vmem_limit),
    )(xb, w1, params["b1"], w2, params["b2"], w3, b3)
    return out[:, :d_out]


# ---------------------------------------------------------------------------
# Parameter init (matches shapes in DCNPooling.__init__; last layer zeroed)
# ---------------------------------------------------------------------------
def init_dcn_pooling_params(key, pooled_size, output_dim, deform_fc_dim):
    d_in = pooled_size * pooled_size * output_dim
    d_out = pooled_size * pooled_size * 3
    k1, k2, k3, k4 = jax.random.split(key, 4)

    def linear(kw, kb, fan_in, fan_out):
        bound = 1.0 / float(fan_in) ** 0.5
        w = jax.random.uniform(kw, (fan_in, fan_out), jnp.float32, -bound, bound)
        b = jax.random.uniform(kb, (1, fan_out), jnp.float32, -bound, bound)
        return w, b

    w1, b1 = linear(k1, k2, d_in, deform_fc_dim)
    w2, b2 = linear(k3, k4, deform_fc_dim, deform_fc_dim)
    # offset_mask_fc[4].weight / bias are zero-initialized in the reference
    w3 = jnp.zeros((deform_fc_dim, d_out), jnp.float32)
    b3 = jnp.zeros((1, d_out), jnp.float32)
    return {"w1": w1, "b1": b1, "w2": w2, "b2": b2, "w3": w3, "b3": b3}


# ---------------------------------------------------------------------------
# DCNPooling forward
# ---------------------------------------------------------------------------
def dcn_pooling_forward(x_nchw, rois, params, *, spatial_scale, pooled_size,
                        output_dim, no_trans, sample_per_part=4, trans_std=0.0,
                        hw_chunk=None):
    assert x_nchw.shape[1] == output_dim
    n = rois.shape[0]
    ps = pooled_size
    nbins = ps * ps
    spp2 = sample_per_part * sample_per_part
    S = nbins * spp2
    B, C, H, W = x_nchw.shape

    # Lane-dense flattened feature layout; bf16 halves HBM/VMEM traffic and is
    # MXU-native (accuracy tradeoff ~1e-3 relative vs f32).
    x_flat = x_nchw.reshape(B, C, H * W).astype(jnp.bfloat16)

    # Pad the ROI count to a multiple of 8: sublane-aligned FC row tiles and an
    # even megacore split on v7x; padded ROIs are dropped at the end.
    n_pad = max(8, -(-n // 8) * 8)
    rois_f = rois.astype(jnp.float32)
    if n_pad != n:
        rois_f = jnp.concatenate(
            [rois_f, jnp.zeros((n_pad - n, 5), jnp.float32)], axis=0)

    # Sort ROIs by batch index so consecutive grid steps can reuse a resident
    # feature-map block; un-permute the output at the end.
    bidx = rois_f[:, 0].astype(jnp.int32)
    order = jnp.argsort(bidx)
    inv = jnp.argsort(order)
    rois_s = rois_f[order]
    bidx_s = bidx[order]

    def pool(off_samples, mask_bins):
        return dcn_v2_psroi_pooling(
            x_flat, rois_s, bidx_s, off_samples, mask_bins,
            spatial_scale=spatial_scale, pooled_size=ps,
            sample_per_part=sample_per_part, trans_std=trans_std,
            height=H, width=W, hw_chunk=hw_chunk)

    zero_off = jnp.zeros((n_pad, 2, S), jnp.float32)
    one_mask = jnp.ones((n_pad, 1, nbins), jnp.float32)

    if no_trans:
        pooled = pool(zero_off, one_mask)                     # (n_pad, C, nbins)
        return pooled[inv][:n].reshape(n, C, ps, ps)

    # 1) plain PSROI pooling (the no_trans=True call inside DCNPooling.forward)
    roi_pool = pool(zero_off, one_mask)                       # (n_pad, C, nbins)
    roi_flat = roi_pool.reshape(n_pad, C * nbins)             # == roi.view(n, -1)

    # 2) offset / mask MLP (mask sigmoid fused into the kernel epilogue)
    om = offset_mask_fc(roi_flat, params, nbins=nbins)        # (n_pad, 3*nbins)
    off_bins = om[:, :2 * nbins].reshape(n_pad, 2, nbins)
    mask = om[:, 2 * nbins:3 * nbins].reshape(n_pad, 1, nbins)
    off_samples = jnp.repeat(off_bins, spp2, axis=2)          # per-sample expand

    # 3) deformable PSROI pooling; modulation-mask multiply fused in the kernel
    pooled = pool(off_samples, mask)
    return pooled[inv][:n].reshape(n, C, ps, ps)


# ---------------------------------------------------------------------------
# Pure-JAX reference for the pooling op (gather-based bilinear; mirrors the
# kernel's floor(x+0.5) rounding and f32 coordinate math).
# ---------------------------------------------------------------------------
def _psroi_reference(x, rois, offset_s, mask, *, spatial_scale, pooled_size,
                     sample_per_part, trans_std, height, width):
    x = x.astype(jnp.float32)
    n = rois.shape[0]
    ps, spp = pooled_size, sample_per_part
    spp2 = spp * spp
    nbins = ps * ps
    S = nbins * spp2
    s = jnp.arange(S)
    bin_idx, within = s // spp2, s % spp2
    ph = (bin_idx // ps).astype(jnp.float32)
    pw = (bin_idx % ps).astype(jnp.float32)
    ih = (within // spp).astype(jnp.float32)
    iw = (within % spp).astype(jnp.float32)
    outs = []
    for r in range(n):
        b = int(rois[r, 0])
        rsw = jnp.floor(rois[r, 1] + 0.5) * spatial_scale - 0.5
        rsh = jnp.floor(rois[r, 2] + 0.5) * spatial_scale - 0.5
        rew = (jnp.floor(rois[r, 3] + 0.5) + 1.0) * spatial_scale - 0.5
        reh = (jnp.floor(rois[r, 4] + 0.5) + 1.0) * spatial_scale - 0.5
        rw = jnp.maximum(rew - rsw, 0.1)
        rh = jnp.maximum(reh - rsh, 0.1)
        bw, bh = rw / ps, rh / ps
        sbw, sbh = bw / spp, bh / spp
        tx = offset_s[r, 0] * trans_std
        ty = offset_s[r, 1] * trans_std
        w = pw * bw + rsw + tx * rw + iw * sbw
        h = ph * bh + rsh + ty * rh + ih * sbh
        valid = jnp.logical_not((w < -0.5) | (w > width - 0.5) |
                                (h < -0.5) | (h > height - 0.5))
        wc = jnp.clip(w, 0.0, width - 1.0)
        hc = jnp.clip(h, 0.0, height - 1.0)
        x1, x2 = jnp.floor(wc), jnp.ceil(wc)
        y1, y2 = jnp.floor(hc), jnp.ceil(hc)
        dx, dy = wc - x1, hc - y1
        img = x[b]

        def g(yy, xx):
            return img[:, yy.astype(jnp.int32), xx.astype(jnp.int32)]   # (C, S)

        val = ((1 - dx) * (1 - dy) * g(y1, x1) + dx * (1 - dy) * g(y1, x2) +
               (1 - dx) * dy * g(y2, x1) + dx * dy * g(y2, x2))
        val = val * valid.astype(jnp.float32)
        cnt = valid.reshape(nbins, spp2).sum(-1).astype(jnp.float32)
        avg = jnp.where(cnt > 0,
                        val.reshape(img.shape[0], nbins, spp2).sum(-1) /
                        jnp.maximum(cnt, 1.0), 0.0)
        outs.append(avg * mask[r])
    return jnp.stack(outs)


if __name__ == "__main__":
    key = jax.random.PRNGKey(0)
    k_x, k_p, k_x2, k_o1, k_o2 = jax.random.split(key, 5)

    # Primary test: full DCNPooling forward (no_trans=False), default chunking
    # (feature map VMEM-resident, factorized interpolation path).
    B, C, H, W = 2, 4, 16, 16
    pooled_size = 4
    n_rois = 4
    spatial_scale = 1.0
    sample_per_part = 4
    trans_std = 0.1
    deform_fc_dim = 128
    nbins = pooled_size * pooled_size
    S = nbins * sample_per_part * sample_per_part

    x = jax.random.normal(k_x, (B, C, H, W), jnp.float32)
    rois = jnp.array([                 # deliberately unsorted batch indices
        [0.0, 1.0, 1.0, 10.0, 12.0],
        [1.0, 3.0, 5.0, 14.0, 15.0],
        [0.0, 4.0, 2.0, 15.0, 9.0],
        [1.0, 0.0, 0.0, 7.0, 7.0],
    ], jnp.float32)

    params = init_dcn_pooling_params(k_p, pooled_size, C, deform_fc_dim)

    fwd = jax.jit(functools.partial(
        dcn_pooling_forward, spatial_scale=spatial_scale,
        pooled_size=pooled_size, output_dim=C, no_trans=False,
        sample_per_part=sample_per_part, trans_std=trans_std))
    out = jax.block_until_ready(fwd(x, rois, params))
    assert out.shape == (n_rois, C, pooled_size, pooled_size)
    assert out.dtype == jnp.float32
    assert bool(jnp.all(jnp.isfinite(out)))

    # The chunked-accumulation path (hw_chunk=128 -> 2 chunks/ROI) must agree
    # with the resident single-chunk path.
    fwd_chunked = jax.jit(functools.partial(
        dcn_pooling_forward, spatial_scale=spatial_scale,
        pooled_size=pooled_size, output_dim=C, no_trans=False,
        sample_per_part=sample_per_part, trans_std=trans_std, hw_chunk=128))
    out_chunked = jax.block_until_ready(fwd_chunked(x, rois, params))
    assert bool(jnp.allclose(out, out_chunked, rtol=2e-2, atol=2e-2))

    # no_trans=True path.
    fwd_nt = jax.jit(functools.partial(
        dcn_pooling_forward, spatial_scale=spatial_scale,
        pooled_size=pooled_size, output_dim=C, no_trans=True,
        sample_per_part=sample_per_part, trans_std=0.0))
    out_nt = jax.block_until_ready(fwd_nt(x, rois, params))
    assert out_nt.shape == (n_rois, C, pooled_size, pooled_size)
    assert bool(jnp.all(jnp.isfinite(out_nt)))

    # Numeric check of the pooling kernel (factorized path, nonzero trans
    # offsets) against a pure-JAX gather-based reference.
    off1 = 0.5 * jax.random.normal(k_o1, (n_rois, 2, S), jnp.float32)
    ones_mask1 = jnp.ones((n_rois, 1, nbins), jnp.float32)
    pooled1 = jax.block_until_ready(dcn_v2_psroi_pooling(
        x.reshape(B, C, H * W).astype(jnp.bfloat16),
        rois, rois[:, 0].astype(jnp.int32), off1, ones_mask1,
        spatial_scale=spatial_scale, pooled_size=pooled_size,
        sample_per_part=sample_per_part, trans_std=trans_std,
        height=H, width=W))
    ref1 = _psroi_reference(
        x, rois, off1, ones_mask1, spatial_scale=spatial_scale,
        pooled_size=pooled_size, sample_per_part=sample_per_part,
        trans_std=trans_std, height=H, width=W)
    assert bool(jnp.allclose(pooled1, ref1, rtol=5e-2, atol=5e-2))

    # Secondary test: odd spatial size (HW=120 -> padded to 128) exercises the
    # HW-padding + fallback interpolation path, with nonzero trans offsets.
    B2, C2, H2, W2 = 1, 3, 10, 12
    x2 = jax.random.normal(k_x2, (B2, C2, H2, W2), jnp.float32)
    rois2 = jnp.array([[0.0, 1.0, 1.0, 8.0, 9.0],
                       [0.0, 2.0, 0.0, 11.0, 7.0]], jnp.float32)
    off2 = 0.5 * jax.random.normal(k_o2, (2, 2, S), jnp.float32)
    ones_mask2 = jnp.ones((2, 1, nbins), jnp.float32)
    pooled2 = jax.block_until_ready(dcn_v2_psroi_pooling(
        x2.reshape(B2, C2, H2 * W2).astype(jnp.bfloat16),
        rois2, rois2[:, 0].astype(jnp.int32), off2, ones_mask2,
        spatial_scale=1.0, pooled_size=pooled_size,
        sample_per_part=sample_per_part, trans_std=0.1, height=H2, width=W2))
    assert pooled2.shape == (2, C2, nbins)
    ref2 = _psroi_reference(
        x2, rois2, off2, ones_mask2, spatial_scale=1.0,
        pooled_size=pooled_size, sample_per_part=sample_per_part,
        trans_std=0.1, height=H2, width=W2)
    assert bool(jnp.allclose(pooled2, ref2, rtol=5e-2, atol=5e-2))

    print("KERNEL_OK")
</pallas_src>

<mosaic_0001>
module attributes {stable_mosaic.version = 11 : i64} {
  func.func @_psroi_kernel(%arg0: i32, %arg1: i32, %arg2: memref<8xi32, #tpu.memory_space<smem>>, %arg3: memref<5x8xf32, #tpu.memory_space<smem>>, %arg4: memref<1x4x256xbf16, #tpu.memory_space<vmem>>, %arg5: memref<1x2x256xf32, #tpu.memory_space<vmem>>, %arg6: memref<1x1x16xf32, #tpu.memory_space<vmem>>, %arg7: memref<256x16xf32, #tpu.memory_space<vmem>>, %arg8: memref<1x4x16xf32, #tpu.memory_space<vmem>>, %arg9: memref<4x256xf32, #tpu.memory_space<vmem>>) attributes {dimension_semantics = [#tpu.dimension_semantics<parallel>, #tpu.dimension_semantics<arbitrary>], iteration_bounds = array<i64: 8, 1>, scalar_prefetch = 1 : i64, scratch_operands = 1 : i64, tpu.core_type = #tpu.core_type<tc>, window_params = [{transform_indices = @transform_0, window_bounds = array<i64: 5, 8>}, {transform_indices = @transform_1, window_bounds = array<i64: 1, 4, 256>}, {transform_indices = @transform_2, window_bounds = array<i64: 1, 2, 256>}, {transform_indices = @transform_3, window_bounds = array<i64: 1, 1, 16>}, {pipeline_mode = #tpu.pipeline_mode<synchronous>, transform_indices = @transform_4, window_bounds = array<i64: 256, 16>}, {transform_indices = @transform_5, window_bounds = array<i64: 1, 4, 16>}]} {
    %c0_i32 = arith.constant 0 : i32
    %0 = arith.cmpi eq, %arg1, %c0_i32 : i32
    %1 = arith.extui %0 : i1 to i32
    %c0_i32_0 = arith.constant 0 : i32
    %2 = arith.cmpi ne, %1, %c0_i32_0 : i32
    scf.if %2 {
      %cst_55 = arith.constant 0.000000e+00 : f32
      %192 = vector.broadcast %cst_55 : f32 to vector<4x256xf32>
      %c0_56 = arith.constant 0 : index
      %c0_57 = arith.constant 0 : index
      %193 = vector.load %arg9[%c0_56, %c0_57] : memref<4x256xf32, #tpu.memory_space<vmem>>, vector<4x256xf32>
      tpu.vector_store %arg9[%c0_56, %c0_57], %192 {strides = array<i32>} : memref<4x256xf32, #tpu.memory_space<vmem>>, vector<4x256xf32>,
    } else {
    }
    %c1 = arith.constant 1 : index
    %3 = arith.index_cast %arg0 : i32 to index
    %4 = memref.load %arg3[%c1, %3] : memref<5x8xf32, #tpu.memory_space<smem>>
    %5 = vector.broadcast %4 : f32 to vector<1x1xf32>
    %c2 = arith.constant 2 : index
    %6 = arith.index_cast %arg0 : i32 to index
    %7 = memref.load %arg3[%c2, %6] : memref<5x8xf32, #tpu.memory_space<smem>>
    %8 = vector.broadcast %7 : f32 to vector<1x1xf32>
    %c3 = arith.constant 3 : index
    %9 = arith.index_cast %arg0 : i32 to index
    %10 = memref.load %arg3[%c3, %9] : memref<5x8xf32, #tpu.memory_space<smem>>
    %11 = vector.broadcast %10 : f32 to vector<1x1xf32>
    %c4 = arith.constant 4 : index
    %12 = arith.index_cast %arg0 : i32 to index
    %13 = memref.load %arg3[%c4, %12] : memref<5x8xf32, #tpu.memory_space<smem>>
    %14 = vector.broadcast %13 : f32 to vector<1x1xf32>
    %cst = arith.constant 5.000000e-01 : f32
    %15 = vector.broadcast %cst : f32 to vector<1x1xf32>
    %16 = arith.addf %5, %15 : vector<1x1xf32>
    %17 = math.floor %16 : vector<1x1xf32>
    %cst_1 = arith.constant 1.000000e+00 : f32
    %18 = vector.broadcast %cst_1 : f32 to vector<1x1xf32>
    %19 = arith.mulf %17, %18 : vector<1x1xf32>
    %cst_2 = arith.constant 5.000000e-01 : f32
    %20 = vector.broadcast %cst_2 : f32 to vector<1x1xf32>
    %21 = arith.subf %19, %20 : vector<1x1xf32>
    %cst_3 = arith.constant 5.000000e-01 : f32
    %22 = vector.broadcast %cst_3 : f32 to vector<1x1xf32>
    %23 = arith.addf %8, %22 : vector<1x1xf32>
    %24 = math.floor %23 : vector<1x1xf32>
    %cst_4 = arith.constant 1.000000e+00 : f32
    %25 = vector.broadcast %cst_4 : f32 to vector<1x1xf32>
    %26 = arith.mulf %24, %25 : vector<1x1xf32>
    %cst_5 = arith.constant 5.000000e-01 : f32
    %27 = vector.broadcast %cst_5 : f32 to vector<1x1xf32>
    %28 = arith.subf %26, %27 : vector<1x1xf32>
    %cst_6 = arith.constant 5.000000e-01 : f32
    %29 = vector.broadcast %cst_6 : f32 to vector<1x1xf32>
    %30 = arith.addf %11, %29 : vector<1x1xf32>
    %31 = math.floor %30 : vector<1x1xf32>
    %cst_7 = arith.constant 1.000000e+00 : f32
    %32 = vector.broadcast %cst_7 : f32 to vector<1x1xf32>
    %33 = arith.addf %31, %32 : vector<1x1xf32>
    %cst_8 = arith.constant 1.000000e+00 : f32
    %34 = vector.broadcast %cst_8 : f32 to vector<1x1xf32>
    %35 = arith.mulf %33, %34 : vector<1x1xf32>
    %cst_9 = arith.constant 5.000000e-01 : f32
    %36 = vector.broadcast %cst_9 : f32 to vector<1x1xf32>
    %37 = arith.subf %35, %36 : vector<1x1xf32>
    %cst_10 = arith.constant 5.000000e-01 : f32
    %38 = vector.broadcast %cst_10 : f32 to vector<1x1xf32>
    %39 = arith.addf %14, %38 : vector<1x1xf32>
    %40 = math.floor %39 : vector<1x1xf32>
    %cst_11 = arith.constant 1.000000e+00 : f32
    %41 = vector.broadcast %cst_11 : f32 to vector<1x1xf32>
    %42 = arith.addf %40, %41 : vector<1x1xf32>
    %cst_12 = arith.constant 1.000000e+00 : f32
    %43 = vector.broadcast %cst_12 : f32 to vector<1x1xf32>
    %44 = arith.mulf %42, %43 : vector<1x1xf32>
    %cst_13 = arith.constant 5.000000e-01 : f32
    %45 = vector.broadcast %cst_13 : f32 to vector<1x1xf32>
    %46 = arith.subf %44, %45 : vector<1x1xf32>
    %47 = arith.subf %37, %21 : vector<1x1xf32>
    %cst_14 = arith.constant 1.000000e-01 : f32
    %48 = vector.broadcast %cst_14 : f32 to vector<1x1xf32>
    %49 = arith.maximumf %47, %48 : vector<1x1xf32>
    %50 = arith.subf %46, %28 : vector<1x1xf32>
    %cst_15 = arith.constant 1.000000e-01 : f32
    %51 = vector.broadcast %cst_15 : f32 to vector<1x1xf32>
    %52 = arith.maximumf %50, %51 : vector<1x1xf32>
    %cst_16 = arith.constant 4.000000e+00 : f32
    %53 = vector.broadcast %cst_16 : f32 to vector<1x1xf32>
    %54 = arith.divf %49, %53 : vector<1x1xf32>
    %cst_17 = arith.constant 4.000000e+00 : f32
    %55 = vector.broadcast %cst_17 : f32 to vector<1x1xf32>
    %56 = arith.divf %52, %55 : vector<1x1xf32>
    %cst_18 = arith.constant 4.000000e+00 : f32
    %57 = vector.broadcast %cst_18 : f32 to vector<1x1xf32>
    %58 = arith.divf %54, %57 : vector<1x1xf32>
    %cst_19 = arith.constant 4.000000e+00 : f32
    %59 = vector.broadcast %cst_19 : f32 to vector<1x1xf32>
    %60 = arith.divf %56, %59 : vector<1x1xf32>
    %61 = tpu.iota {dimensions = array<i32: 1>} : vector<1x256xi32>
    %62 = arith.sitofp %61 : vector<1x256xi32> to vector<1x256xf32>
    %cst_20 = arith.constant 1.600000e+01 : f32
    %63 = vector.broadcast %cst_20 : f32 to vector<1x256xf32>
    %64 = arith.divf %62, %63 : vector<1x256xf32>
    %65 = math.floor %64 : vector<1x256xf32>
    %cst_21 = arith.constant 1.600000e+01 : f32
    %66 = vector.broadcast %cst_21 : f32 to vector<1x256xf32>
    %67 = arith.mulf %65, %66 : vector<1x256xf32>
    %68 = arith.subf %62, %67 : vector<1x256xf32>
    %cst_22 = arith.constant 4.000000e+00 : f32
    %69 = vector.broadcast %cst_22 : f32 to vector<1x256xf32>
    %70 = arith.divf %65, %69 : vector<1x256xf32>
    %71 = math.floor %70 : vector<1x256xf32>
    %cst_23 = arith.constant 4.000000e+00 : f32
    %72 = vector.broadcast %cst_23 : f32 to vector<1x256xf32>
    %73 = arith.mulf %71, %72 : vector<1x256xf32>
    %74 = arith.subf %65, %73 : vector<1x256xf32>
    %cst_24 = arith.constant 4.000000e+00 : f32
    %75 = vector.broadcast %cst_24 : f32 to vector<1x256xf32>
    %76 = arith.divf %68, %75 : vector<1x256xf32>
    %77 = math.floor %76 : vector<1x256xf32>
    %cst_25 = arith.constant 4.000000e+00 : f32
    %78 = vector.broadcast %cst_25 : f32 to vector<1x256xf32>
    %79 = arith.mulf %77, %78 : vector<1x256xf32>
    %80 = arith.subf %68, %79 : vector<1x256xf32>
    %c0 = arith.constant 0 : index
    %c0_26 = arith.constant 0 : index
    %c0_27 = arith.constant 0 : index
    %81 = vector.load %arg5[%c0, %c0_26, %c0_27] : memref<1x2x256xf32, #tpu.memory_space<vmem>>, vector<1x2x256xf32>
    %82 = vector.shape_cast %81 : vector<1x2x256xf32> to vector<2x256xf32>
    %83 = vector.extract_strided_slice %82 {offsets = [0, 0], sizes = [1, 256], strides = [1, 1]} : vector<2x256xf32> to vector<1x256xf32>
    %cst_28 = arith.constant 1.000000e-01 : f32
    %84 = vector.broadcast %cst_28 : f32 to vector<1x256xf32>
    %85 = arith.mulf %83, %84 : vector<1x256xf32>
    %86 = vector.extract_strided_slice %82 {offsets = [1, 0], sizes = [1, 256], strides = [1, 1]} : vector<2x256xf32> to vector<1x256xf32>
    %cst_29 = arith.constant 1.000000e-01 : f32
    %87 = vector.broadcast %cst_29 : f32 to vector<1x256xf32>
    %88 = arith.mulf %86, %87 : vector<1x256xf32>
    %89 = vector.broadcast %54 : vector<1x1xf32> to vector<1x256xf32>
    %90 = arith.mulf %74, %89 : vector<1x256xf32>
    %91 = vector.broadcast %21 : vector<1x1xf32> to vector<1x256xf32>
    %92 = arith.addf %90, %91 : vector<1x256xf32>
    %93 = vector.broadcast %49 : vector<1x1xf32> to vector<1x256xf32>
    %94 = arith.mulf %85, %93 : vector<1x256xf32>
    %95 = arith.addf %92, %94 : vector<1x256xf32>
    %96 = vector.broadcast %56 : vector<1x1xf32> to vector<1x256xf32>
    %97 = arith.mulf %71, %96 : vector<1x256xf32>
    %98 = vector.broadcast %28 : vector<1x1xf32> to vector<1x256xf32>
    %99 = arith.addf %97, %98 : vector<1x256xf32>
    %100 = vector.broadcast %52 : vector<1x1xf32> to vector<1x256xf32>
    %101 = arith.mulf %88, %100 : vector<1x256xf32>
    %102 = arith.addf %99, %101 : vector<1x256xf32>
    %103 = vector.broadcast %58 : vector<1x1xf32> to vector<1x256xf32>
    %104 = arith.mulf %80, %103 : vector<1x256xf32>
    %105 = arith.addf %95, %104 : vector<1x256xf32>
    %106 = vector.broadcast %60 : vector<1x1xf32> to vector<1x256xf32>
    %107 = arith.mulf %77, %106 : vector<1x256xf32>
    %108 = arith.addf %102, %107 : vector<1x256xf32>
    %cst_30 = arith.constant -5.000000e-01 : f32
    %109 = vector.broadcast %cst_30 : f32 to vector<1x256xf32>
    %110 = arith.cmpf olt, %105, %109 : vector<1x256xf32>
    %cst_31 = arith.constant 1.550000e+01 : f32
    %111 = vector.broadcast %cst_31 : f32 to vector<1x256xf32>
    %112 = arith.cmpf ogt, %105, %111 : vector<1x256xf32>
    %113 = arith.ori %110, %112 : vector<1x256xi1>
    %cst_32 = arith.constant -5.000000e-01 : f32
    %114 = vector.broadcast %cst_32 : f32 to vector<1x256xf32>
    %115 = arith.cmpf olt, %108, %114 : vector<1x256xf32>
    %116 = arith.ori %113, %115 : vector<1x256xi1>
    %cst_33 = arith.constant 1.550000e+01 : f32
    %117 = vector.broadcast %cst_33 : f32 to vector<1x256xf32>
    %118 = arith.cmpf ogt, %108, %117 : vector<1x256xf32>
    %119 = arith.ori %116, %118 : vector<1x256xi1>
    %cst_34 = arith.constant dense<true> : vector<1x256xi1>
    %120 = arith.xori %119, %cst_34 : vector<1x256xi1>
    %121 = arith.extui %120 : vector<1x256xi1> to vector<1x256xi32>
    %122 = arith.sitofp %121 : vector<1x256xi32> to vector<1x256xf32>
    %cst_35 = arith.constant 0.000000e+00 : f32
    %cst_36 = arith.constant 1.500000e+01 : f32
    %123 = vector.broadcast %cst_35 : f32 to vector<1x256xf32>
    %124 = arith.maximumf %123, %105 : vector<1x256xf32>
    %125 = vector.broadcast %cst_36 : f32 to vector<1x256xf32>
    %126 = arith.minimumf %125, %124 : vector<1x256xf32>
    %cst_37 = arith.constant 0.000000e+00 : f32
    %cst_38 = arith.constant 1.500000e+01 : f32
    %127 = vector.broadcast %cst_37 : f32 to vector<1x256xf32>
    %128 = arith.maximumf %127, %108 : vector<1x256xf32>
    %129 = vector.broadcast %cst_38 : f32 to vector<1x256xf32>
    %130 = arith.minimumf %129, %128 : vector<1x256xf32>
    %131 = math.floor %126 : vector<1x256xf32>
    %132 = math.ceil %126 : vector<1x256xf32>
    %133 = math.floor %130 : vector<1x256xf32>
    %134 = math.ceil %130 : vector<1x256xf32>
    %135 = arith.subf %126, %131 : vector<1x256xf32>
    %136 = arith.subf %130, %133 : vector<1x256xf32>
    %c16_i32 = arith.constant 16 : i32
    %137 = arith.muli %arg1, %c16_i32 : i32
    %138 = tpu.iota {dimensions = array<i32: 0>} : vector<16x256xi32>
    %139 = vector.broadcast %137 : i32 to vector<16x256xi32>
    %140 = arith.addi %139, %138 : vector<16x256xi32>
    %141 = arith.sitofp %140 : vector<16x256xi32> to vector<16x256xf32>
    %142 = vector.broadcast %133 : vector<1x256xf32> to vector<16x256xf32>
    %143 = arith.cmpf oeq, %141, %142 : vector<16x256xf32>
    %cst_39 = arith.constant 1.000000e+00 : f32
    %144 = vector.broadcast %cst_39 : f32 to vector<1x256xf32>
    %145 = arith.subf %144, %136 : vector<1x256xf32>
    %cst_40 = arith.constant 0.000000e+00 : f32
    %146 = vector.shape_cast %145 : vector<1x256xf32> to vector<1x256xf32>
    %147 = vector.broadcast %146 : vector<1x256xf32> to vector<16x256xf32>
    %148 = vector.broadcast %cst_40 : f32 to vector<16x256xf32>
    %149 = arith.select %143, %147, %148 : vector<16x256xi1>, vector<16x256xf32>
    %150 = vector.broadcast %134 : vector<1x256xf32> to vector<16x256xf32>
    %151 = arith.cmpf oeq, %141, %150 : vector<16x256xf32>
    %cst_41 = arith.constant 0.000000e+00 : f32
    %152 = vector.shape_cast %136 : vector<1x256xf32> to vector<1x256xf32>
    %153 = vector.broadcast %152 : vector<1x256xf32> to vector<16x256xf32>
    %154 = vector.broadcast %cst_41 : f32 to vector<16x256xf32>
    %155 = arith.select %151, %153, %154 : vector<16x256xi1>, vector<16x256xf32>
    %156 = arith.addf %149, %155 : vector<16x256xf32>
    %157 = tpu.iota {dimensions = array<i32: 0>} : vector<16x256xi32>
    %158 = arith.sitofp %157 : vector<16x256xi32> to vector<16x256xf32>
    %159 = vector.broadcast %131 : vector<1x256xf32> to vector<16x256xf32>
    %160 = arith.cmpf oeq, %158, %159 : vector<16x256xf32>
    %cst_42 = arith.constant 1.000000e+00 : f32
    %161 = vector.broadcast %cst_42 : f32 to vector<1x256xf32>
    %162 = arith.subf %161, %135 : vector<1x256xf32>
    %cst_43 = arith.constant 0.000000e+00 : f32
    %163 = vector.shape_cast %162 : vector<1x256xf32> to vector<1x256xf32>
    %164 = vector.broadcast %163 : vector<1x256xf32> to vector<16x256xf32>
    %165 = vector.broadcast %cst_43 : f32 to vector<16x256xf32>
    %166 = arith.select %160, %164, %165 : vector<16x256xi1>, vector<16x256xf32>
    %167 = vector.broadcast %132 : vector<1x256xf32> to vector<16x256xf32>
    %168 = arith.cmpf oeq, %158, %167 : vector<16x256xf32>
    %cst_44 = arith.constant 0.000000e+00 : f32
    %169 = vector.shape_cast %135 : vector<1x256xf32> to vector<1x256xf32>
    %170 = vector.broadcast %169 : vector<1x256xf32> to vector<16x256xf32>
    %171 = vector.broadcast %cst_44 : f32 to vector<16x256xf32>
    %172 = arith.select %168, %170, %171 : vector<16x256xi1>, vector<16x256xf32>
    %173 = arith.addf %166, %172 : vector<16x256xf32>
    %174 = vector.broadcast %122 : vector<1x256xf32> to vector<16x256xf32>
    %175 = arith.mulf %173, %174 : vector<16x256xf32>
    %176 = vector.shape_cast %156 : vector<16x256xf32> to vector<16x1x256xf32>
    %177 = vector.shape_cast %175 : vector<16x256xf32> to vector<1x16x256xf32>
    %178 = vector.broadcast %176 : vector<16x1x256xf32> to vector<16x16x256xf32>
    %179 = vector.broadcast %177 : vector<1x16x256xf32> to vector<16x16x256xf32>
    %180 = arith.mulf %178, %179 : vector<16x16x256xf32>
    %181 = vector.shape_cast %180 : vector<16x16x256xf32> to vector<256x256xf32>
    %c0_45 = arith.constant 0 : index
    %c0_46 = arith.constant 0 : index
    %c0_47 = arith.constant 0 : index
    %182 = vector.load %arg4[%c0_45, %c0_46, %c0_47] : memref<1x4x256xbf16, #tpu.memory_space<vmem>>, vector<1x4x256xbf16>
    %183 = vector.shape_cast %182 : vector<1x4x256xbf16> to vector<4x256xbf16>
    %c0_48 = arith.constant 0 : index
    %c0_49 = arith.constant 0 : index
    %184 = vector.load %arg9[%c0_48, %c0_49] : memref<4x256xf32, #tpu.memory_space<vmem>>, vector<4x256xf32>
    %185 = arith.truncf %181 : vector<256x256xf32> to vector<256x256xbf16>
    %cst_50 = arith.constant dense<0.000000e+00> : vector<4x256xf32>
    %186 = tpu.matmul %183, %185, %cst_50 {dimension_numbers = #tpu.dot_dimension_numbers<[1], [0], [0], [1], [0, 0, 1, 1], [], []>} : vector<4x256xbf16>, vector<256x256xbf16>, vector<4x256xf32> -> vector<4x256xf32>
    %187 = arith.addf %184, %186 : vector<4x256xf32>
    %c0_51 = arith.constant 0 : index
    %c0_52 = arith.constant 0 : index
    %188 = vector.load %arg9[%c0_51, %c0_52] : memref<4x256xf32, #tpu.memory_space<vmem>>, vector<4x256xf32>
    tpu.vector_store %arg9[%c0_51, %c0_52], %187 {strides = array<i32>} : memref<4x256xf32, #tpu.memory_space<vmem>>, vector<4x256xf32>,
    %c0_i32_53 = arith.constant 0 : i32
    %189 = arith.cmpi eq, %arg1, %c0_i32_53 : i32
    %190 = arith.extui %189 : i1 to i32
    %c0_i32_54 = arith.constant 0 : i32
    %191 = arith.cmpi ne, %190, %c0_i32_54 : i32
    scf.if %191 {
      %c0_55 = arith.constant 0 : index
      %c0_56 = arith.constant 0 : index
      %192 = vector.load %arg7[%c0_55, %c0_56] : memref<256x16xf32, #tpu.memory_space<vmem>>, vector<256x16xf32>
      %c0_57 = arith.constant 0 : index
      %c0_58 = arith.constant 0 : index
      %193 = vector.load %arg9[%c0_57, %c0_58] : memref<4x256xf32, #tpu.memory_space<vmem>>, vector<4x256xf32>
      %cst_59 = arith.constant dense<0.000000e+00> : vector<4x16xf32>
      %194 = tpu.matmul %193, %192, %cst_59 {dimension_numbers = #tpu.dot_dimension_numbers<[1], [0], [0], [1], [0, 0, 1, 1], [], []>} : vector<4x256xf32>, vector<256x16xf32>, vector<4x16xf32> -> vector<4x16xf32>
      %cst_60 = arith.constant dense<0.000000e+00> : vector<1x16xf32>
      %195 = tpu.matmul %122, %192, %cst_60 {dimension_numbers = #tpu.dot_dimension_numbers<[1], [0], [0], [1], [0, 0, 1, 1], [], []>} : vector<1x256xf32>, vector<256x16xf32>, vector<1x16xf32> -> vector<1x16xf32>
      %cst_61 = arith.constant 0.000000e+00 : f32
      %196 = vector.broadcast %cst_61 : f32 to vector<1x16xf32>
      %197 = arith.cmpf ogt, %195, %196 : vector<1x16xf32>
      %cst_62 = arith.constant 1.000000e+00 : f32
      %198 = vector.broadcast %cst_62 : f32 to vector<1x16xf32>
      %199 = arith.maximumf %195, %198 : vector<1x16xf32>
      %200 = vector.broadcast %199 : vector<1x16xf32> to vector<4x16xf32>
      %201 = arith.divf %194, %200 : vector<4x16xf32>
      %cst_63 = arith.constant 0.000000e+00 : f32
      %202 = vector.shape_cast %197 : vector<1x16xi1> to vector<1x16xi1>
      %203 = vector.broadcast %202 : vector<1x16xi1> to vector<4x16xi1>
      %204 = vector.broadcast %cst_63 : f32 to vector<4x16xf32>
      %205 = arith.select %203, %201, %204 : vector<4x16xi1>, vector<4x16xf32>
      %c0_64 = arith.constant 0 : index
      %c0_65 = arith.constant 0 : index
      %c0_66 = arith.constant 0 : index
      %206 = vector.load %arg6[%c0_64, %c0_65, %c0_66] : memref<1x1x16xf32, #tpu.memory_space<vmem>>, vector<1x1x16xf32>
      %207 = vector.shape_cast %206 : vector<1x1x16xf32> to vector<1x16xf32>
      %208 = vector.broadcast %207 : vector<1x16xf32> to vector<4x16xf32>
      %209 = arith.mulf %205, %208 : vector<4x16xf32>
      %c0_67 = arith.constant 0 : index
      %c0_68 = arith.constant 0 : index
      %c0_69 = arith.constant 0 : index
      %210 = vector.load %arg8[%c0_67, %c0_68, %c0_69] : memref<1x4x16xf32, #tpu.memory_space<vmem>>, vector<1x4x16xf32>
      %211 = vector.shape_cast %210 : vector<1x4x16xf32> to vector<4x16xf32>
      %212 = vector.shape_cast %209 : vector<4x16xf32> to vector<1x4x16xf32>
      tpu.vector_store %arg8[%c0_67, %c0_68, %c0_69], %212 {strides = array<i32>} : memref<1x4x16xf32, #tpu.memory_space<vmem>>, vector<1x4x16xf32>,
    } else {
    }
    return
  }
  func.func @transform_0(%arg0: i32, %arg1: i32, %arg2: memref<8xi32, #tpu.memory_space<smem>>) -> (i32, i32) {
    %c0_i32 = arith.constant 0 : i32
    %c0_i32_0 = arith.constant 0 : i32
    %c0_i32_1 = arith.constant 0 : i32
    return %c0_i32, %c0_i32_0 : i32, i32
  }
  func.func @transform_1(%arg0: i32, %arg1: i32, %arg2: memref<8xi32, #tpu.memory_space<smem>>) -> (i32, i32, i32) {
    %0 = arith.index_cast %arg0 : i32 to index
    %1 = memref.load %arg2[%0] : memref<8xi32, #tpu.memory_space<smem>>
    %c0_i32 = arith.constant 0 : i32
    %c0_i32_0 = arith.constant 0 : i32
    return %1, %c0_i32, %arg1 : i32, i32, i32
  }
  func.func @transform_2(%arg0: i32, %arg1: i32, %arg2: memref<8xi32, #tpu.memory_space<smem>>) -> (i32, i32, i32) {
    %c0_i32 = arith.constant 0 : i32
    %c0_i32_0 = arith.constant 0 : i32
    %c0_i32_1 = arith.constant 0 : i32
    return %arg0, %c0_i32, %c0_i32_0 : i32, i32, i32
  }
  func.func @transform_3(%arg0: i32, %arg1: i32, %arg2: memref<8xi32, #tpu.memory_space<smem>>) -> (i32, i32, i32) {
    %c0_i32 = arith.constant 0 : i32
    %c0_i32_0 = arith.constant 0 : i32
    %c0_i32_1 = arith.constant 0 : i32
    return %arg0, %c0_i32, %c0_i32_0 : i32, i32, i32
  }
  func.func @transform_4(%arg0: i32, %arg1: i32, %arg2: memref<8xi32, #tpu.memory_space<smem>>) -> (i32, i32) {
    %c0_i32 = arith.constant 0 : i32
    %c0_i32_0 = arith.constant 0 : i32
    %c0_i32_1 = arith.constant 0 : i32
    return %c0_i32, %c0_i32_0 : i32, i32
  }
  func.func @transform_5(%arg0: i32, %arg1: i32, %arg2: memref<8xi32, #tpu.memory_space<smem>>) -> (i32, i32, i32) {
    %c0_i32 = arith.constant 0 : i32
    %c0_i32_0 = arith.constant 0 : i32
    %c0_i32_1 = arith.constant 0 : i32
    return %arg0, %c0_i32, %c0_i32_0 : i32, i32, i32
  }
}

module attributes {stable_mosaic.version = 11 : i64} {
  func.func @_fc_kernel(%arg0: i32, %arg1: i32, %arg2: memref<8x64xbf16, #tpu.memory_space<vmem>>, %arg3: memref<64x128xbf16, #tpu.memory_space<vmem>>, %arg4: memref<1x128xf32, #tpu.memory_space<vmem>>, %arg5: memref<128x128xbf16, #tpu.memory_space<vmem>>, %arg6: memref<1x128xf32, #tpu.memory_space<vmem>>, %arg7: memref<128x128xbf16, #tpu.memory_space<vmem>>, %arg8: memref<1x128xf32, #tpu.memory_space<vmem>>, %arg9: memref<8x128xf32, #tpu.memory_space<vmem>>, %arg10: memref<8x128xf32, #tpu.memory_space<vmem>>) attributes {dimension_semantics = [#tpu.dimension_semantics<parallel>, #tpu.dimension_semantics<arbitrary>], iteration_bounds = array<i64: 1, 1>, scalar_prefetch = 0 : i64, scratch_operands = 1 : i64, tpu.core_type = #tpu.core_type<tc>, window_params = [{transform_indices = @transform_0, window_bounds = array<i64: 8, 64>}, {transform_indices = @transform_1, window_bounds = array<i64: 64, 128>}, {pipeline_mode = #tpu.pipeline_mode<synchronous>, transform_indices = @transform_2, window_bounds = array<i64: 1, 128>}, {pipeline_mode = #tpu.pipeline_mode<synchronous>, transform_indices = @transform_3, window_bounds = array<i64: 128, 128>}, {pipeline_mode = #tpu.pipeline_mode<synchronous>, transform_indices = @transform_4, window_bounds = array<i64: 1, 128>}, {pipeline_mode = #tpu.pipeline_mode<synchronous>, transform_indices = @transform_5, window_bounds = array<i64: 128, 128>}, {pipeline_mode = #tpu.pipeline_mode<synchronous>, transform_indices = @transform_6, window_bounds = array<i64: 1, 128>}, {transform_indices = @transform_7, window_bounds = array<i64: 8, 128>}]} {
    %c0_i32 = arith.constant 0 : i32
    %0 = arith.cmpi eq, %arg1, %c0_i32 : i32
    %1 = arith.extui %0 : i1 to i32
    %c0_i32_0 = arith.constant 0 : i32
    %2 = arith.cmpi ne, %1, %c0_i32_0 : i32
    scf.if %2 {
      %cst_10 = arith.constant 0.000000e+00 : f32
      %12 = vector.broadcast %cst_10 : f32 to vector<8x128xf32>
      %c0_11 = arith.constant 0 : index
      %c0_12 = arith.constant 0 : index
      %13 = vector.load %arg10[%c0_11, %c0_12] : memref<8x128xf32, #tpu.memory_space<vmem>>, vector<8x128xf32>
      tpu.vector_store %arg10[%c0_11, %c0_12], %12 {strides = array<i32>} : memref<8x128xf32, #tpu.memory_space<vmem>>, vector<8x128xf32>,
    } else {
    }
    %c0 = arith.constant 0 : index
    %c0_1 = arith.constant 0 : index
    %3 = vector.load %arg10[%c0, %c0_1] : memref<8x128xf32, #tpu.memory_space<vmem>>, vector<8x128xf32>
    %c0_2 = arith.constant 0 : index
    %c0_3 = arith.constant 0 : index
    %4 = vector.load %arg2[%c0_2, %c0_3] : memref<8x64xbf16, #tpu.memory_space<vmem>>, vector<8x64xbf16>
    %c0_4 = arith.constant 0 : index
    %c0_5 = arith.constant 0 : index
    %5 = vector.load %arg3[%c0_4, %c0_5] : memref<64x128xbf16, #tpu.memory_space<vmem>>, vector<64x128xbf16>
    %cst = arith.constant dense<0.000000e+00> : vector<8x128xf32>
    %6 = tpu.matmul %4, %5, %cst {dimension_numbers = #tpu.dot_dimension_numbers<[1], [0], [0], [1], [0, 0, 1, 1], [], []>} : vector<8x64xbf16>, vector<64x128xbf16>, vector<8x128xf32> -> vector<8x128xf32>
    %7 = arith.addf %3, %6 : vector<8x128xf32>
    %c0_6 = arith.constant 0 : index
    %c0_7 = arith.constant 0 : index
    %8 = vector.load %arg10[%c0_6, %c0_7] : memref<8x128xf32, #tpu.memory_space<vmem>>, vector<8x128xf32>
    tpu.vector_store %arg10[%c0_6, %c0_7], %7 {strides = array<i32>} : memref<8x128xf32, #tpu.memory_space<vmem>>, vector<8x128xf32>,
    %c0_i32_8 = arith.constant 0 : i32
    %9 = arith.cmpi eq, %arg1, %c0_i32_8 : i32
    %10 = arith.extui %9 : i1 to i32
    %c0_i32_9 = arith.constant 0 : i32
    %11 = arith.cmpi ne, %10, %c0_i32_9 : i32
    scf.if %11 {
      %c0_10 = arith.constant 0 : index
      %c0_11 = arith.constant 0 : index
      %12 = vector.load %arg10[%c0_10, %c0_11] : memref<8x128xf32, #tpu.memory_space<vmem>>, vector<8x128xf32>
      %c0_12 = arith.constant 0 : index
      %c0_13 = arith.constant 0 : index
      %13 = vector.load %arg4[%c0_12, %c0_13] : memref<1x128xf32, #tpu.memory_space<vmem>>, vector<1x128xf32>
      %14 = vector.broadcast %13 : vector<1x128xf32> to vector<8x128xf32>
      %15 = arith.addf %12, %14 : vector<8x128xf32>
      %cst_14 = arith.constant 0.000000e+00 : f32
      %16 = vector.broadcast %cst_14 : f32 to vector<8x128xf32>
      %17 = arith.maximumf %15, %16 : vector<8x128xf32>
      %18 = arith.truncf %17 : vector<8x128xf32> to vector<8x128xbf16>
      %c0_15 = arith.constant 0 : index
      %c0_16 = arith.constant 0 : index
      %19 = vector.load %arg5[%c0_15, %c0_16] : memref<128x128xbf16, #tpu.memory_space<vmem>>, vector<128x128xbf16>
      %cst_17 = arith.constant dense<0.000000e+00> : vector<8x128xf32>
      %20 = tpu.matmul %18, %19, %cst_17 {dimension_numbers = #tpu.dot_dimension_numbers<[1], [0], [0], [1], [0, 0, 1, 1], [], []>} : vector<8x128xbf16>, vector<128x128xbf16>, vector<8x128xf32> -> vector<8x128xf32>
      %c0_18 = arith.constant 0 : index
      %c0_19 = arith.constant 0 : index
      %21 = vector.load %arg6[%c0_18, %c0_19] : memref<1x128xf32, #tpu.memory_space<vmem>>, vector<1x128xf32>
      %22 = vector.broadcast %21 : vector<1x128xf32> to vector<8x128xf32>
      %23 = arith.addf %20, %22 : vector<8x128xf32>
      %cst_20 = arith.constant 0.000000e+00 : f32
      %24 = vector.broadcast %cst_20 : f32 to vector<8x128xf32>
      %25 = arith.maximumf %23, %24 : vector<8x128xf32>
      %26 = arith.truncf %25 : vector<8x128xf32> to vector<8x128xbf16>
      %c0_21 = arith.constant 0 : index
      %c0_22 = arith.constant 0 : index
      %27 = vector.load %arg7[%c0_21, %c0_22] : memref<128x128xbf16, #tpu.memory_space<vmem>>, vector<128x128xbf16>
      %cst_23 = arith.constant dense<0.000000e+00> : vector<8x128xf32>
      %28 = tpu.matmul %26, %27, %cst_23 {dimension_numbers = #tpu.dot_dimension_numbers<[1], [0], [0], [1], [0, 0, 1, 1], [], []>} : vector<8x128xbf16>, vector<128x128xbf16>, vector<8x128xf32> -> vector<8x128xf32>
      %c0_24 = arith.constant 0 : index
      %c0_25 = arith.constant 0 : index
      %29 = vector.load %arg8[%c0_24, %c0_25] : memref<1x128xf32, #tpu.memory_space<vmem>>, vector<1x128xf32>
      %30 = vector.broadcast %29 : vector<1x128xf32> to vector<8x128xf32>
      %31 = arith.addf %28, %30 : vector<8x128xf32>
      %32 = tpu.iota {dimensions = array<i32: 1>} : vector<8x128xi32>
      %c32_i32 = arith.constant 32 : i32
      %33 = vector.broadcast %c32_i32 : i32 to vector<8x128xi32>
      %34 = arith.cmpi sge, %32, %33 : vector<8x128xi32>
      %c48_i32 = arith.constant 48 : i32
      %35 = vector.broadcast %c48_i32 : i32 to vector<8x128xi32>
      %36 = arith.cmpi slt, %32, %35 : vector<8x128xi32>
      %37 = arith.andi %34, %36 : vector<8x128xi1>
      %38 = arith.negf %31 : vector<8x128xf32>
      %39 = math.exp %38 : vector<8x128xf32>
      %cst_26 = arith.constant 1.000000e+00 : f32
      %40 = vector.broadcast %cst_26 : f32 to vector<8x128xf32>
      %41 = arith.addf %40, %39 : vector<8x128xf32>
      %42 = arith.divf %40, %41 : vector<8x128xf32>
      %43 = arith.select %37, %42, %31 : vector<8x128xi1>, vector<8x128xf32>
      %c0_27 = arith.constant 0 : index
      %c0_28 = arith.constant 0 : index
      %44 = vector.load %arg9[%c0_27, %c0_28] : memref<8x128xf32, #tpu.memory_space<vmem>>, vector<8x128xf32>
      tpu.vector_store %arg9[%c0_27, %c0_28], %43 {strides = array<i32>} : memref<8x128xf32, #tpu.memory_space<vmem>>, vector<8x128xf32>,
    } else {
    }
    return
  }
  func.func @transform_0(%arg0: i32, %arg1: i32) -> (i32, i32) {
    %c0_i32 = arith.constant 0 : i32
    return %arg0, %arg1 : i32, i32
  }
  func.func @transform_1(%arg0: i32, %arg1: i32) -> (i32, i32) {
    %c0_i32 = arith.constant 0 : i32
    %c0_i32_0 = arith.constant 0 : i32
    return %arg1, %c0_i32 : i32, i32
  }
  func.func @transform_2(%arg0: i32, %arg1: i32) -> (i32, i32) {
    %c0_i32 = arith.constant 0 : i32
    %c0_i32_0 = arith.constant 0 : i32
    %c0_i32_1 = arith.constant 0 : i32
    return %c0_i32, %c0_i32_0 : i32, i32
  }
  func.func @transform_3(%arg0: i32, %arg1: i32) -> (i32, i32) {
    %c0_i32 = arith.constant 0 : i32
    %c0_i32_0 = arith.constant 0 : i32
    %c0_i32_1 = arith.constant 0 : i32
    return %c0_i32, %c0_i32_0 : i32, i32
  }
  func.func @transform_4(%arg0: i32, %arg1: i32) -> (i32, i32) {
    %c0_i32 = arith.constant 0 : i32
    %c0_i32_0 = arith.constant 0 : i32
    %c0_i32_1 = arith.constant 0 : i32
    return %c0_i32, %c0_i32_0 : i32, i32
  }
  func.func @transform_5(%arg0: i32, %arg1: i32) -> (i32, i32) {
    %c0_i32 = arith.constant 0 : i32
    %c0_i32_0 = arith.constant 0 : i32
    %c0_i32_1 = arith.constant 0 : i32
    return %c0_i32, %c0_i32_0 : i32, i32
  }
  func.func @transform_6(%arg0: i32, %arg1: i32) -> (i32, i32) {
    %c0_i32 = arith.constant 0 : i32
    %c0_i32_0 = arith.constant 0 : i32
    %c0_i32_1 = arith.constant 0 : i32
    return %c0_i32, %c0_i32_0 : i32, i32
  }
  func.func @transform_7(%arg0: i32, %arg1: i32) -> (i32, i32) {
    %c0_i32 = arith.constant 0 : i32
    %c0_i32_0 = arith.constant 0 : i32
    return %arg0, %c0_i32 : i32, i32
  }
}

</mosaic_0001>

<bundles_post_ra>
// kernel: dcn_pooling_forward.4
= control target key start
LH: loop header
LB: loop body
LE: loop exit
PB: predicated region body
PF: predicated region fallthrough
CT: control target
= control target key end

     0   :  { %vm66_vm0 = vcmask 523264   ;;  %v260_v40 = vlaneseq  ;;  %s514_s1 = inlined_call_operand.vmem [shape: bf16[64,128], index: 1, kind: input, shape index: {}]   ;;  %s515_s3 = inlined_call_operand.vmem [shape: bf16[128,128], index: 3, kind: input, shape index: {}]   ;;  %s516_s2 = inlined_call_operand.vmem [shape: f32[1,128], index: 2, kind: input, shape index: {}]   ;;  %s517_s0 = inlined_call_operand.vmem [shape: bf16[8,64], index: 0, kind: input, shape index: {}]   ;;  %s518_s4 = inlined_call_operand.vmem [shape: f32[1,128], index: 4, kind: input, shape index: {}]   ;;  %s519_s5 = inlined_call_operand.vmem [shape: bf16[128,128], index: 5, kind: input, shape index: {}]   ;;  %s520_s6 = inlined_call_operand.vmem [shape: f32[1,128], index: 6, kind: input, shape index: {}]   ;;  %s521_s7 = inlined_call_operand.vmem [shape: f32[8,128], index: 7, kind: output, shape index: {}]  }
   0x1   :  { %v375_v0 = vld [vmem:[%s514_s1 + $0x18] sm:$0xff]  ;;  %v374_v2 = vld [vmem:[%s514_s1 + $0x10] sm:$0xff]  ;;  %v373_v4 = vld [vmem:[%s514_s1 + $0x8] sm:$0xff] }
   0x2   :  { %v383_v1 = vld [vmem:[%s515_s3 + $0x38] sm:$0xff]  ;;  %74 = vmatpush.bf16.msra.mxu0 %v375_v0  ;;  %v382_v3 = vld [vmem:[%s515_s3 + $0x30] sm:$0xff]  ;;  %v381_v5 = vld [vmem:[%s515_s3 + $0x28] sm:$0xff]  ;;  %v261_v42 = vand.u32 127, %v260_v40 }
   0x3   :  { %164 = vmatpush.bf16.msra.mxu1 %v383_v1  ;;  %v372_v6 = vld [vmem:[%s514_s1] sm:$0xff]  ;;  %v379_v9 = vld [vmem:[%s515_s3 + $0x18] sm:$0xff]  ;;  %v378_v10 = vld [vmem:[%s515_s3 + $0x10] sm:$0xff] }
   0x4   :  { %v380_v7 = vld [vmem:[%s515_s3 + $0x20] sm:$0xff]  ;;  %v377_v11 = vld [vmem:[%s515_s3 + $0x8] sm:$0xff]  ;;  %v391_v13 = vld [vmem:[%s519_s5 + $0x38] sm:$0xff]  ;;  %vm262_vm1 = vcmp.ge.s32.totalorder %v261_v42, 32  ;;  %vm263_vm2 = vcmp.lt.s32.totalorder %v261_v42, 48 }
   0x5   :  { %v33_v8 = vld [vmem:[%s517_s0] sm:$0xf]  ;;  %247 = vmatpush.bf16.msra.mxu2 %v391_v13  ;;  %v390_v14 = vld [vmem:[%s519_s5 + $0x30] sm:$0xff]  ;;  %v389_v15 = vld [vmem:[%s519_s5 + $0x28] sm:$0xff] }
   0x6   :  { %75 = vmatpush.bf16.msra.mxu0 %v374_v2  ;;  %v376_v12 = vld [vmem:[%s515_s3] sm:$0xff]  ;;  %v387_v17 = vld [vmem:[%s519_s5 + $0x18] sm:$0xff]  ;;  %v386_v18 = vld [vmem:[%s519_s5 + $0x10] sm:$0xff] }
   0x7   :  { %165 = vmatpush.bf16.msra.mxu1 %v382_v3  ;;  %v388_v16 = vld [vmem:[%s519_s5 + $0x20] sm:$0xff]  ;;  %v385_v25 = vld [vmem:[%s519_s5 + $0x8] sm:$0xff]  ;;  %vm264_vm4 = vmand %vm262_vm1, %vm263_vm2 }
   0x8   :  { %v392_v19 = vld [vmem:[%s516_s2] ss:$0 sm:$0xff] }
   0x9   :  { %248 = vmatpush.bf16.msra.mxu2 %v390_v14  ;;  %v384_v26 = vld [vmem:[%s519_s5] sm:$0xff] }
   0xa   :  { %76 = vmatpush.bf16.msra.mxu0 %v373_v4  ;;  %v393_v27 = vld [vmem:[%s518_s4] ss:$0 sm:$0xff] }
   0xb   :  { %166 = vmatpush.bf16.msra.mxu1 %v381_v5  ;;  %v394_v33 = vld [vmem:[%s520_s6] ss:$0 sm:$0xff] }
   0xd   :  { %249 = vmatpush.bf16.msra.mxu2 %v389_v15 }
   0xe   :  { %77 = vmatpush.bf16.msra.mxu0 %v372_v6 }
   0xf   :  { %167 = vmatpush.bf16.msra.mxu1 %v380_v7 }
  0x11   :  { %306 = vmatmul.msk.bf16.vlgmr.msra.gmra.mxu0 %vm66_vm0, %v33_v8  ;;  %250 = vmatpush.bf16.msra.mxu2 %v388_v16 }
  0x13   :  { %168 = vmatpush.bf16.msra.mxu1 %v379_v9 }
  0x15   :  { %251 = vmatpush.bf16.msra.mxu2 %v387_v17 }
  0x17   :  { %169 = vmatpush.bf16.msra.mxu1 %v378_v10 }
  0x19   :  { %252 = vmatpush.bf16.msra.mxu2 %v386_v18 }
  0x1b   :  { %170 = vmatpush.bf16.msra.mxu1 %v377_v11 }
  0x1d   :  { %253 = vmatpush.bf16.msra.mxu2 %v385_v25 }
  0x1f   :  { %171 = vmatpush.bf16.msra.mxu1 %v376_v12 }
  0x21   :  { %254 = vmatpush.bf16.msra.mxu2 %v384_v26 }
  0x8e   :  { %v79_v20 = vpop.f32.mrf.mxu0 }
  0x8f   :  { %v93_v21 = vadd.f32 %v392_v19, %v79_v20 }
  0x91   :  { %v94_v22 = vmax.f32 %v93_v21, 0.0 }
  0x93   :  { %v95_v23 = vpack.c.bf16 %v94_v22, %v94_v22 }
  0x95   :  { %172 = vmatmul.bf16.vlgmr.msra.gmra.mxu1 %v95_v23 }
  0x96   :  { %v81_v24 = vpop.f32.mrf.mxu0 }
 0x112   :  { %v173_v28 = vpop.f32.mrf.mxu1 }
 0x113   :  { %v174_v29 = vadd.f32 %v393_v27, %v173_v28 }
 0x115   :  { %v177_v30 = vmax.f32 %v174_v29, 0.0 }
 0x117   :  { %v178_v31 = vpack.c.bf16 %v177_v30, %v177_v30 }
 0x119   :  { %255 = vmatmul.bf16.vlgmr.msra.gmra.mxu2 %v178_v31 }
 0x11a   :  { %v175_v32 = vpop.f32.mrf.mxu1 }
 0x19c   :  { %v256_v34 = vpop.f32.mrf.mxu2 }
 0x19d   :  { %v257_v35 = vadd.f32 %v394_v33, %v256_v34 }
 0x19f   :  { %v371_v36 = vmul.f32 -1.442695, %v257_v35 }
 0x1a1   :  { %395 = vpow2.f32 %v371_v36 }
 0x1a4   :  { %v258_v37 = vpop.f32.mrf.mxu2 }
 0x1a7   :  { %v396_v38 = vpop.eup %395 }
 0x1a8   :  { %v268_v39 = vadd.f32 1.0, %v396_v38 }
 0x1aa   :  { %397 = vrcp.f32 %v268_v39  ;;  %v280_v45 = vand.u32 2147483648, %v268_v39  ;;  %v278_v47 = vand.u32 2147483647, %v268_v39  ;;  %vm274_vm5 = vweird.f32 %v268_v39 }
 0x1ac   :  { %v281_v49 = vor.u32 1.1754944e-38, %v280_v45  ;;  %vm279_vm7 = vcmp.eq.f32.partialorder %v278_v47, 8.507059e+37 }
 0x1b0   :  { %v398_v41 = vpop.eup %397 }
 0x1b1   :  { %v270_v43 = vmul.f32 %v398_v41, %v268_v39  ;;  %vm275_vm3 = vweird.f32 %v398_v41 }
 0x1b2   :  { %vm276_vm6 = vmor %vm274_vm5, %vm275_vm3 }
 0x1b3   :  { %v271_v44 = vsub.f32 1.0, %v270_v43 }
 0x1b5   :  { %v272_v46 = vmul.f32 %v398_v41, %v271_v44 }
 0x1b7   :  { %v273_v48 = vadd.f32 %v398_v41, %v272_v46 }
 0x1b9   :  { %v277_v50 = vsel %vm276_vm6, %v398_v41, %v273_v48 }
 0x1ba   :  { %v282_v51 = vsel %vm279_vm7, %v281_v49, %v277_v50 }
 0x1bb   :  { %v284_v52 = vsel %vm264_vm4, %v282_v51, %v257_v35 }
 0x1bc   :  { %285 = vst [vmem:[%s521_s7] sm:$0xff] %v284_v52 }

// kernel: dcn_pooling_forward.3
= control target key start
LH: loop header
LB: loop body
LE: loop exit
PB: predicated region body
PF: predicated region fallthrough
CT: control target
= control target key end

     0   :  { %s1223_s24 = smov [#allocation4]   ;;  %s1628_s0 = inlined_call_operand.vmem [shape: s32[8], index: 0, kind: input, shape index: {}]   ;;  %s1629_s1 = inlined_call_operand.vmem [shape: f32[5,8], index: 1, kind: input, shape index: {}]   ;;  %s1630_s2 = inlined_call_operand.vmem [shape: bf16[2,4,256], index: 2, kind: input, shape index: {}]   ;;  %s1631_s3 = inlined_call_operand.vmem [shape: f32[8,2,256], index: 3, kind: input, shape index: {}]   ;;  %s1632_s4 = inlined_call_operand.vmem [shape: f32[8,1,16], index: 4, kind: input, shape index: {}]   ;;  %s1633_s5 = inlined_call_operand.vmem [shape: f32[256,16], index: 5, kind: input, shape index: {}]   ;;  %s1634_s6 = inlined_call_operand.vmem [shape: f32[8,4,16], index: 6, kind: output, shape index: {}]  }
   0x1   :  { %s12_s23 = sshll.u32 %s1628_s0, 4  ;;  %s13_s23 = int_to_ptr.vmem [resolvable:$true] %s12_s23 }
   0x2   :  { %15 = dma.vmem_to_smem %s13_s23, 16, %s1223_s24, [#allocation3] }
   0x3   :  { %1205 = dma.done.wait [#allocation3], 16 }
   0x4   :  { %1206 = vsyncadd [#allocation3], 4294967280 }
   0x5   :  { %18 = sfence }
   0x6   :  { %19 = vsyncpa [#allocation6], 0  ;;  %s1268_s25 = smov 0   ;;  %s1270_s26 = smov 0  }
   0x7   :  { %s1272_s27 = smov 0  }
   0x8 LB: > { %s1084_s0 = sadd.s32 4294967295, %s1221_s27   ;;  %s37_s28 = sadd.s32 1, %s1217_s26  ;;  %s1221_s27 = sphi %s1272_s27, %s25_s27   ;;  %s1217_s26 = sphi %s1270_s26, %s1636_s26   ;;  %s1213_s25 = sphi %s1268_s25, %s1635_s25  }
   0x9   : > { %p39_p0 = scmp.ge.s32.totalorder %s37_s28, 8  ;;  %p1086_p1 = scmp.ge.s32.totalorder %s1221_s27, 1 }
   0xa   : > { %p192_p2 = scmp.lt.s32.totalorder %s1221_s27, 9  ;;  %p1126_p4 = scmp.eq.s32.totalorder %s1084_s0, 0 }
   0xb   : > { %s1638_s28 = smov (%p39_p0, %s37_s28), 0  ;;  %s204_s7 = sshll.u32 %s1629_s1, 4  ;;  %s205_s7 = int_to_ptr.vmem [resolvable:$true] %s204_s7 }
   0xc   : > { %p193_p3 = pnand %p1086_p1, %p192_p2  ;;  %s1224_s8 = smov [#allocation5]  }
   0xe   : > { %p1122_p5 = pneg %p193_p3  ;;  %249 = sbr.rel (%p193_p3) target bundleno = 412 (0x19c), region = 40 }
  0x10   : > { %p1123_p6 = pnand %p1126_p4, %p1122_p5 }
  0x12   : > { %1125 = dma.vmem_to_smem (!%p1123_p6), %s205_s7, 128, %s1224_s8, [#allocation6]  }
  0x13   : > { %1208 = dma.done.wait (%p1126_p4), [#allocation6], 128  }
  0x14   : > { %1210 = vsyncadd (%p1126_p4), [#allocation6], 4294967168 }
  0x15   : > { %256 = sfence }
  0x16   : > { %s320_s9 = sshra.s32 %s1213_s25, 7  ;;  %v1225_v0 = vmov 4.0   ;;  %s325_s11 = sand.u32 127, %s1213_s25  ;;  %v373_v1 = vlaneseq  ;;  %v1226_v2 = vmov 16.0  }
  0x17   : > { %1160 = vrcp.f32 %v1225_v0  ;;  %s1110_s10 = sshll.u32 %s320_s9, 7  ;;  %p303_p7 = scmp.lt.s32.totalorder %s1213_s25, 7 }
  0x18   : > { %1162 = vrcp.f32 %v1226_v2  ;;  %s1111_s12 = sadd.s32 128, %s1110_s10  ;;  %s1113_s13 = sadd.s32 256, %s1110_s10  ;;  %v374_v3 = vand.u32 127, %v373_v1  ;;  %v485_v61 = vshrl.u32 %v373_v1, 7 }
  0x19   : > { %s326_s14 = sadd.s32 %s1111_s12, %s325_s11  ;;  %s331_s16 = sadd.s32 %s1113_s13, %s325_s11 }
  0x1a   : > { %s327_s15 = sld [smem:[#allocation5 + %s326_s14]]  ;;  %s1115_s17 = sadd.s32 384, %s1110_s10  ;;  %v375_v9 = vadd.s32 128, %v374_v3  ;;  %v376_v15 = vcvt.s32.f32 %v374_v3 }
  0x1b   : > { %s332_s18 = sld [smem:[#allocation5 + %s331_s16]]  ;;  %s336_s19 = sadd.s32 %s1115_s17, %s325_s11 }
  0x1c   : > { %s337_s20 = sld [smem:[#allocation5 + %s336_s19]]  ;;  %s1117_s21 = sadd.s32 512, %s1110_s10  ;;  %v377_v19 = vcvt.s32.f32 %v375_v9 }
  0x1d   : > { %v1161_v4 = vpop.eup %1160  ;;  %s341_s22 = sadd.s32 %s1117_s21, %s325_s11  ;;  %s1331_s8 = sld [smem:[#allocation4 + %s1213_s25]] }
  0x1e   : > { %v1163_v5 = vpop.eup %1162  ;;  %v363_v6 = vmul.f32 4.0, %v1161_v4  ;;  %s342_s23 = sld [smem:[#allocation5 + %s341_s22]]  ;;  %vm367_vm1 = vweird.f32 %v1161_v4 }
  0x1f   : > { %v379_v7 = vmul.f32 16.0, %v1163_v5  ;;  %s1299_s24 = scalar_select %p303_p7, %s1213_s25, 7  ;;  %vm383_vm0 = vweird.f32 %v1163_v5 }
  0x20   : > { %v364_v8 = vsub.f32 1.0, %v363_v6  ;;  %v328_v10 = vstv %s327_s15 }
  0x21   : > { %v380_v11 = vsub.f32 1.0, %v379_v7  ;;  %v344_v12 = vadd.f32 0.5, %v328_v10  ;;  %v333_v14 = vstv %s332_s18  ;;  %s1109_s0 = sshll.u32 %s1299_s24, 2  ;;  %s310_s18 = scalar_lea.vmem %s1632_s4, %s1299_s24 }
  0x22   : > { %v365_v13 = vmul.f32 %v1161_v4, %v364_v8  ;;  %v338_v17 = vstv %s337_s20  ;;  %v347_v18 = vadd.f32 0.5, %v333_v14  ;;  %s307_s7 = scalar_lea.vmem %s1631_s3, %s1109_s0 }
  0x23   : > { %v381_v16 = vmul.f32 %v1163_v5, %v380_v11  ;;  %v345_v20 = vfloor.f32 %v344_v12  ;;  %v350_v21 = vadd.f32 0.5, %v338_v17  ;;  %v409_v44 = vld [vmem:[%s307_s7] sm:$0xf]  ;;  %p293_p8 = scmp.lt.s32.totalorder %s1331_s8, 1 }
  0x24   : > { %v366_v22 = vadd.f32 %v1161_v4, %v365_v13  ;;  %v343_v24 = vstv %s342_s23  ;;  %v348_v25 = vfloor.f32 %v347_v18  ;;  %v410_v53 = vmul.f32 0.1, %v409_v44  ;;  %s314_s23 = scalar_lea.vmem %s1634_s6, %s1109_s0 }
  0x25   : > { %v382_v23 = vadd.f32 %v1163_v5, %v381_v16  ;;  %v351_v26 = vfloor.f32 %v350_v21  ;;  %v354_v27 = vadd.f32 0.5, %v343_v24  ;;  %v1100_v31 = vadd.f32 -0.5, %v345_v20  ;;  %s1640_s8 = smov (!%p293_p8, %s1331_s8), 1 }
  0x26   : > { %v368_v34 = vsel %vm367_vm1, %v1161_v4, %v366_v22  ;;  %v1101_v37 = vadd.f32 -0.5, %v348_v25  ;;  %s1108_s25 = sshll.u32 %s1640_s8, 2 }
  0x27   : > { %v384_v28 = vsel %vm383_vm0, %v1163_v5, %v382_v23  ;;  %v352_v32 = vadd.f32 1.0, %v351_v26  ;;  %v355_v33 = vfloor.f32 %v354_v27  ;;  %vm1227_vm0 = vmmov 1   ;;  %s300_s11 = scalar_lea.vmem %s1630_s2, %s1108_s25 }
  0x28   : > { %v385_v29 = vmul.f32 %v384_v28, %v376_v15  ;;  %v386_v30 = vmul.f32 %v384_v28, %v377_v19 }
  0x29   : > { %v1102_v38 = vadd.f32 -0.5, %v352_v32  ;;  %v356_v39 = vadd.f32 1.0, %v355_v33 }
  0x2a   : > { %v387_v35 = vfloor.f32 %v385_v29  ;;  %v388_v36 = vfloor.f32 %v386_v30 }
  0x2b   : > { %v1103_v45 = vadd.f32 -0.5, %v356_v39  ;;  %v358_v46 = vsub.f32 %v1102_v38, %v1100_v31 }
  0x2c   : > { %v389_v40 = vmul.f32 16.0, %v387_v35  ;;  %v390_v41 = vmul.f32 16.0, %v388_v36  ;;  %v393_v42 = vmul.f32 %v387_v35, %v368_v34  ;;  %v394_v43 = vmul.f32 %v388_v36, %v368_v34 }
  0x2d   : > { %v359_v51 = vmax.f32 %v358_v46, 0.1  ;;  %v360_v52 = vsub.f32 %v1103_v45, %v1101_v37 }
  0x2e   : > { %v391_v47 = vsub.f32 %v376_v15, %v389_v40  ;;  %v392_v48 = vsub.f32 %v377_v19, %v390_v41  ;;  %v395_v49 = vfloor.f32 %v393_v42  ;;  %v396_v50 = vfloor.f32 %v394_v43 }
  0x2f   : > { %v361_v58 = vmax.f32 %v360_v52, 0.1  ;;  %v369_v59 = vmul.f32 %v368_v34, %v359_v51  ;;  %v415_v60 = vmul.f32 %v410_v53, %v359_v51  ;;  %v1308_v43 = vcvt.s32.f32 %v485_v61 }
  0x30   : > { %v397_v54 = vmul.f32 4.0, %v395_v49  ;;  %v398_v55 = vmul.f32 4.0, %v396_v50  ;;  %v401_v56 = vmul.f32 %v391_v47, %v368_v34  ;;  %v402_v57 = vmul.f32 %v392_v48, %v368_v34 }
  0x31   : > { %v370_v3 = vmul.f32 %v368_v34, %v361_v58  ;;  %v371_v4 = vmul.f32 %v369_v59, %v368_v34  ;;  %v417_v5 = vperm.slane %v415_v60, 0  ;;  %v418_v6 = vperm.slane %v415_v60, 2 }
  0x32   : > { %v399_v62 = vsub.f32 %v387_v35, %v397_v54  ;;  %v400_v63 = vsub.f32 %v388_v36, %v398_v55  ;;  %v403_v0 = vfloor.f32 %v401_v56  ;;  %v404_v2 = vfloor.f32 %v402_v57 }
  0x33   : > { %v372_v11 = vmul.f32 %v370_v3, %v368_v34  ;;  %v423_v12 = vmul.f32 %v395_v49, %v370_v3  ;;  %v424_v13 = vmul.f32 %v396_v50, %v370_v3  ;;  %v427_v14 = vmul.f32 %v410_v53, %v361_v58 }
  0x34   : > { %v405_v7 = vmul.f32 4.0, %v403_v0  ;;  %v406_v8 = vmul.f32 4.0, %v404_v2  ;;  %v411_v9 = vmul.f32 %v399_v62, %v369_v59  ;;  %v412_v10 = vmul.f32 %v400_v63, %v369_v59 }
  0x35   : > { %v425_v18 = vadd.f32 %v1101_v37, %v423_v12  ;;  %v426_v19 = vadd.f32 %v1101_v37, %v424_v13  ;;  %v429_v20 = vperm.slane %v427_v14, 1  ;;  %v430_v21 = vperm.slane %v427_v14, 3 }
  0x36   : > { %v407_v15 = vsub.f32 %v391_v47, %v405_v7  ;;  %v408_v16 = vsub.f32 %v392_v48, %v406_v8  ;;  %v413_v17 = vadd.f32 %v1100_v31, %v411_v9  ;;  %v414_v1 = vadd.f32 %v1100_v31, %v412_v10 }
  0x37   : > { %v433_v26 = vadd.f32 %v429_v20, %v425_v18  ;;  %v434_v27 = vadd.f32 %v430_v21, %v426_v19  ;;  %v439_v28 = vmul.f32 %v403_v0, %v372_v11  ;;  %v440_v29 = vmul.f32 %v404_v2, %v372_v11 }
  0x38   : > { %v421_v22 = vadd.f32 %v417_v5, %v413_v17  ;;  %v422_v23 = vadd.f32 %v418_v6, %v414_v1  ;;  %v435_v24 = vmul.f32 %v407_v15, %v371_v4  ;;  %v436_v25 = vmul.f32 %v408_v16, %v371_v4 }
  0x39   : > { %v441_v33 = vadd.f32 %v439_v28, %v433_v26  ;;  %v442_v34 = vadd.f32 %v440_v29, %v434_v27  ;;  %v486_v31 = vadd.s32 8, %v485_v61  ;;  %v1228_v53 = vmov 0.0  }
  0x3a   : > { %v437_v30 = vadd.f32 %v435_v24, %v421_v22  ;;  %v438_v32 = vadd.f32 %v436_v25, %v422_v23 }
  0x3b   : > { %vm449_vm7 = vcmp.lt.f32.partialorder %v441_v33, -0.5  ;;  %vm450_vm8 = vcmp.lt.f32.partialorder %v442_v34, -0.5  ;;  %vm453_vm9 = vcmp.gt.f32.partialorder %v441_v33, 15.5  ;;  %v467_v37 = vmax.f32 %v441_v33, 0.0 }
  0x3c   : > { %vm443_vm2 = vcmp.lt.f32.partialorder %v437_v30, -0.5  ;;  %vm444_vm3 = vcmp.lt.f32.partialorder %v438_v32, -0.5  ;;  %vm445_vm4 = vcmp.gt.f32.partialorder %v437_v30, 15.5  ;;  %vm446_vm5 = vcmp.gt.f32.partialorder %v438_v32, 15.5 }
  0x3d   : > { %vm447_vm6 = vmor %vm443_vm2, %vm445_vm4  ;;  %v463_v35 = vmax.f32 %v437_v30, 0.0  ;;  %v464_v36 = vmax.f32 %v438_v32, 0.0  ;;  %v468_v38 = vmax.f32 %v442_v34, 0.0  ;;  %vm454_vm12 = vcmp.gt.f32.partialorder %v442_v34, 15.5 }
  0x3e   : > { %vm448_vm10 = vmor %vm444_vm3, %vm446_vm5  ;;  %v469_v41 = vmin.f32 %v467_v37, 15.0  ;;  %v1310_v44 = vcvt.s32.f32 %v486_v31 }
  0x3f   : > { %vm451_vm11 = vmor %vm447_vm6, %vm449_vm7  ;;  %v465_v39 = vmin.f32 %v463_v35, 15.0  ;;  %v466_v40 = vmin.f32 %v464_v36, 15.0  ;;  %v470_v42 = vmin.f32 %v468_v38, 15.0 }
  0x40   : > { %vm452_vm13 = vmor %vm448_vm10, %vm450_vm8  ;;  %v475_v49 = vfloor.f32 %v469_v41  ;;  %v477_v51 = vceil.f32 %v469_v41 }
  0x41   : > { %vm455_vm14 = vmor %vm451_vm11, %vm453_vm9  ;;  %v471_v45 = vfloor.f32 %v465_v39  ;;  %v472_v46 = vfloor.f32 %v466_v40  ;;  %v473_v47 = vceil.f32 %v465_v39  ;;  %v474_v48 = vceil.f32 %v466_v40 }
  0x42   : > { %vm456_vm15 = vmor %vm452_vm13, %vm454_vm12  ;;  %v476_v50 = vfloor.f32 %v470_v42  ;;  %v478_v52 = vceil.f32 %v470_v42  ;;  %v1316_v59 = vsub.f32 %v469_v41, %v475_v49  ;;  %v492_v61 = vperm.slane %v475_v49, 0 }
  0x43   : > { %vm457_vm1 = vmxor %vm455_vm14, %vm1227_vm0  ;;  %v479_v55 = vsub.f32 %v465_v39, %v471_v45  ;;  %v480_v56 = vsub.f32 %v466_v40, %v472_v46  ;;  %v524_v57 = vperm.slane %v471_v45, 0  ;;  %v1322_v63 = vperm.slane %v477_v51, 0 }
  0x44   : > { %vm458_vm2 = vmxor %vm456_vm15, %vm1227_vm0  ;;  %v1312_v54 = vsel %vm457_vm1, 1.0, %v1228_v53  ;;  %v1318_v60 = vsub.f32 %v470_v42, %v476_v50  ;;  %v1320_v62 = vperm.slane %v476_v50, 0  ;;  %v1324_v0 = vperm.slane %v478_v52, 0 }
  0x45   : > { %v1314_v58 = vsel %vm458_vm2, 1.0, %v1228_v53  ;;  %v525_v2 = vperm.slane %v472_v46, 0  ;;  %vm494_vm3 = vcmp.eq.f32.partialorder %v1308_v43, %v492_v61  ;;  %v498_v3 = vsub.f32 1.0, %v1316_v59 }
  0x46   : > { %v499_v4 = vsub.f32 1.0, %v1318_v60  ;;  %v512_v5 = vperm.slane %v1316_v59, 0  ;;  %vm495_vm4 = vcmp.eq.f32.partialorder %v1308_v43, %v1320_v62  ;;  %vm508_vm5 = vcmp.eq.f32.partialorder %v1308_v43, %v1322_v63 }
  0x47   : > { %vm509_vm6 = vcmp.eq.f32.partialorder %v1308_v43, %v1324_v0  ;;  %v513_v6 = vperm.slane %v1318_v60, 0  ;;  %v500_v7 = vperm.slane %v498_v3, 0  ;;  %vm526_vm7 = vcmp.eq.f32.partialorder %v1308_v43, %v524_v57 }
  0x48   : > { %v501_v8 = vperm.slane %v499_v4, 0  ;;  %v514_v9 = vsel %vm508_vm5, %v512_v5, 0.0  ;;  %vm527_vm8 = vcmp.eq.f32.partialorder %v1308_v43, %v525_v2  ;;  %vm528_vm9 = vcmp.eq.f32.partialorder %v1310_v44, %v524_v57 }
  0x49   : > { %v515_v10 = vsel %vm509_vm6, %v513_v6, 0.0  ;;  %vm529_vm10 = vcmp.eq.f32.partialorder %v1310_v44, %v525_v2  ;;  %vm586_vm11 = vcmask 1046528   ;;  %v502_v11 = vsel %vm494_vm3, %v500_v7, 0.0 }
  0x4a   : > { %v503_v12 = vsel %vm495_vm4, %v501_v8, 0.0  ;;  %v530_v13 = vsub.f32 1.0, %v479_v55  ;;  %v531_v14 = vsub.f32 1.0, %v480_v56  ;;  %vm583_vm12 = vcmask 1046534  }
  0x4b   : > { %v1346_v15 = vadd.f32 %v514_v9, %v502_v11  ;;  %v519_v16 = vadd.f32 %v515_v10, %v503_v12  ;;  %v538_v17 = vperm.slane %v473_v47, 0  ;;  %v539_v1 = vperm.slane %v474_v48, 0 }
  0x4c   : > { %vm580_vm13 = vcmask 1045509   ;;  %v532_v18 = vperm.slane %v530_v13, 0  ;;  %v533_v19 = vperm.slane %v531_v14, 0  ;;  %v544_v20 = vperm.slane %v479_v55, 0 }
  0x4d   : > { %v545_v21 = vperm.slane %v480_v56, 0  ;;  %vm540_vm14 = vcmp.eq.f32.partialorder %v1308_v43, %v538_v17  ;;  %vm541_vm15 = vcmp.eq.f32.partialorder %v1308_v43, %v539_v1  ;;  %vm542_vm0 = vcmp.eq.f32.partialorder %v1310_v44, %v538_v17 }
  0x4e   : > { %vm543_vm1 = vcmp.eq.f32.partialorder %v1310_v44, %v539_v1  ;;  %v534_v22 = vsel %vm526_vm7, %v532_v18, 0.0  ;;  %v535_v23 = vsel %vm527_vm8, %v533_v19, 0.0  ;;  %v536_v24 = vsel %vm528_vm9, %v532_v18, 0.0 }
  0x4f   : > { %v537_v25 = vsel %vm529_vm10, %v533_v19, 0.0  ;;  %v546_v26 = vsel %vm540_vm14, %v544_v20, 0.0  ;;  %v547_v27 = vsel %vm541_vm15, %v545_v21, 0.0  ;;  %v548_v28 = vsel %vm542_vm0, %v544_v20, 0.0 }
  0x50   : > { %v549_v29 = vsel %vm543_vm1, %v545_v21, 0.0  ;;  %v550_v30 = vadd.f32 %v546_v26, %v534_v22  ;;  %v551_v32 = vadd.f32 %v547_v27, %v535_v23  ;;  %v552_v33 = vadd.f32 %v548_v28, %v536_v24 }
  0x51   : > { %v553_v34 = vadd.f32 %v549_v29, %v537_v25  ;;  %v554_v31 = vperm.slane %v1312_v54, 0  ;;  %v555_v35 = vperm.slane %v1314_v58, 0  ;;  %v1363_v36 = vrot.slane %v519_v16, 7  ;;  %v732_v16 = vld [vmem:[%s300_s11] sm:$0xf] }
  0x52   : > { %vm496_vm2 = vcmp.eq.f32.partialorder %v1310_v44, %v492_v61  ;;  %vm497_vm3 = vcmp.eq.f32.partialorder %v1310_v44, %v1320_v62  ;;  %vm510_vm4 = vcmp.eq.f32.partialorder %v1310_v44, %v1322_v63  ;;  %vm511_vm5 = vcmp.eq.f32.partialorder %v1310_v44, %v1324_v0  ;;  %767 = vst [vmem:[#allocation1] ss:$4 sm:$0xff] %v732_v16 }
  0x53   : > { %v504_v37 = vsel %vm496_vm2, %v500_v7, 0.0  ;;  %v1377_v38 = vmul.f32 %v554_v31, %v550_v30  ;;  %v1379_v39 = vmul.f32 %v555_v35, %v551_v32  ;;  %v1381_v40 = vmul.f32 %v554_v31, %v552_v33 }
  0x54   : > { %v1383_v41 = vmul.f32 %v555_v35, %v553_v34  ;;  %v587_v42 = vsel %vm586_vm11, %v1363_v36, %v1346_v15  ;;  %v505_v43 = vsel %vm497_vm3, %v501_v8, 0.0  ;;  %v516_v45 = vsel %vm510_vm4, %v512_v5, 0.0 }
  0x55   : > { %v517_v46 = vsel %vm511_vm5, %v513_v6, 0.0  ;;  %v588_v44 = vrot.slane %v587_v42, 7  ;;  %v1388_v47 = vadd.f32 %v516_v45, %v504_v37  ;;  %v584_v49 = vsel %vm583_vm12, %v1346_v15, %v1363_v36 }
  0x56   : > { %v521_v48 = vadd.f32 %v517_v46, %v505_v43  ;;  %v585_v50 = vrot.slane %v584_v49, 6  ;;  %v581_v51 = vsel %vm580_vm13, %v1346_v15, %v1363_v36  ;;  %vm577_vm6 = vcmask 1044484  }
  0x57   : > { %vm574_vm7 = vcmask 1043459   ;;  %v618_v52 = vperm.slane %v588_v44, 0  ;;  %v619_v55 = vperm.slane %v588_v44, 1  ;;  %v582_v56 = vrot.slane %v581_v51, 5 }
  0x58   : > { %v1397_v53 = vrot.slane %v521_v48, 7  ;;  %v616_v57 = vperm.slane %v585_v50, 0  ;;  %v617_v59 = vperm.slane %v585_v50, 1  ;;  %v1402_v60 = vsel %vm577_vm6, %v1346_v15, %v1363_v36 }
  0x59   : > { %v1407_v61 = vsel %vm574_vm7, %v1346_v15, %v1363_v36  ;;  %v696_v62 = vmul.f32 %v618_v52, %v1377_v38  ;;  %v698_v63 = vmul.f32 %v618_v52, %v1381_v40  ;;  %v697_v2 = vmul.f32 %v619_v55, %v1379_v39 }
  0x5a   : > { %v602_v0 = vsel %vm586_vm11, %v1397_v53, %v1388_v47  ;;  %v699_v4 = vmul.f32 %v619_v55, %v1383_v41  ;;  %v692_v5 = vmul.f32 %v616_v57, %v1377_v38  ;;  %v694_v6 = vmul.f32 %v616_v57, %v1381_v40 }
  0x5b   : > { %v603_v3 = vrot.slane %v602_v0, 7  ;;  %v748_v7 = vpack.c.bf16 %v698_v63, %v696_v62  ;;  %v600_v8 = vsel %vm583_vm12, %v1388_v47, %v1397_v53  ;;  %v693_v9 = vmul.f32 %v617_v59, %v1379_v39 }
  0x5c   : > { %v695_v10 = vmul.f32 %v617_v59, %v1383_v41  ;;  %v749_v12 = vpack.c.bf16 %v699_v4, %v697_v2  ;;  %v746_v14 = vpack.c.bf16 %v694_v6, %v692_v5  ;;  %v601_v17 = vrot.slane %v600_v8, 6 }
  0x5d   : > { %v634_v11 = vperm.slane %v603_v3, 0  ;;  %v635_v13 = vperm.slane %v603_v3, 1  ;;  %772 = vmatpush.bf16.msra.mxu0 %v748_v7  ;;  %v614_v18 = vperm.slane %v582_v56, 0  ;;  %v598_v19 = vsel %vm580_vm13, %v1388_v47, %v1397_v53 }
  0x5e   : > { %v747_v1 = vpack.c.bf16 %v695_v10, %v693_v9  ;;  %798 = vmatpush.bf16.msra.mxu2 %v749_v12  ;;  %v632_v24 = vperm.slane %v601_v17, 0  ;;  %v633_v25 = vperm.slane %v601_v17, 1  ;;  %v599_v30 = vrot.slane %v598_v19, 5 }
  0x5f   : > { %v728_v20 = vmul.f32 %v634_v11, %v1377_v38  ;;  %v730_v21 = vmul.f32 %v634_v11, %v1381_v40  ;;  %v729_v22 = vmul.f32 %v635_v13, %v1379_v39  ;;  %v731_v23 = vmul.f32 %v635_v13, %v1383_v41 }
  0x60   : > { %v688_v26 = vmul.f32 %v614_v18, %v1377_v38  ;;  %v690_v27 = vmul.f32 %v614_v18, %v1381_v40  ;;  %v615_v32 = vperm.slane %v582_v56, 1  ;;  %v724_v33 = vmul.f32 %v632_v24, %v1377_v38 }
  0x61   : > { %v764_v28 = vpack.c.bf16 %v730_v21, %v728_v20  ;;  %v765_v29 = vpack.c.bf16 %v731_v23, %v729_v22  ;;  %773 = vmatpush.bf16.msra.mxu0 %v746_v14  ;;  %v726_v34 = vmul.f32 %v632_v24, %v1381_v40  ;;  %v725_v31 = vmul.f32 %v633_v25, %v1379_v39 }
  0x62   : > { %v727_v35 = vmul.f32 %v633_v25, %v1383_v41  ;;  %v744_v37 = vpack.c.bf16 %v690_v27, %v688_v26  ;;  %v630_v42 = vperm.slane %v599_v30, 0  ;;  %v689_v43 = vmul.f32 %v615_v32, %v1379_v39  ;;  %799 = vmatpush.bf16.msra.mxu2 %v747_v1 }
  0x63   : > { %785 = vmatpush.bf16.msra.mxu1 %v764_v28  ;;  %811 = vmatpush.bf16.msra.mxu3 %v765_v29  ;;  %v691_v45 = vmul.f32 %v615_v32, %v1383_v41  ;;  %v762_v46 = vpack.c.bf16 %v726_v34, %v724_v33  ;;  %v631_v48 = vperm.slane %v599_v30, 1  ;;  %v579_v49 = vrot.slane %v1402_v60, 4 }
  0x64   : > { %v763_v44 = vpack.c.bf16 %v727_v35, %v725_v31  ;;  %v720_v50 = vmul.f32 %v630_v42, %v1377_v38  ;;  %v722_v51 = vmul.f32 %v630_v42, %v1381_v40  ;;  %v596_v55 = vsel %vm577_vm6, %v1388_v47, %v1397_v53 }
  0x65   : > { %v745_v52 = vpack.c.bf16 %v691_v45, %v689_v43  ;;  %774 = vmatpush.bf16.msra.mxu0 %v744_v37  ;;  %v721_v56 = vmul.f32 %v631_v48, %v1379_v39  ;;  %v723_v57 = vmul.f32 %v631_v48, %v1383_v41  ;;  %v612_v59 = vperm.slane %v579_v49, 0 }
  0x66   : > { %v597_v62 = vrot.slane %v596_v55, 4  ;;  %v760_v63 = vpack.c.bf16 %v722_v51, %v720_v50  ;;  %v613_v60 = vperm.slane %v579_v49, 1  ;;  %v576_v0 = vrot.slane %v1407_v61, 3 }
  0x67   : > { %786 = vmatpush.bf16.msra.mxu1 %v762_v46  ;;  %812 = vmatpush.bf16.msra.mxu3 %v763_v44  ;;  %v594_v2 = vsel %vm574_vm7, %v1388_v47, %v1397_v53  ;;  %v761_v3 = vpack.c.bf16 %v723_v57, %v721_v56  ;;  %v684_v4 = vmul.f32 %v612_v59, %v1377_v38  ;;  %vm571_vm8 = vcmask 1042434  }
  0x68   : > { %800 = vmatpush.bf16.msra.mxu2 %v745_v52  ;;  %v686_v5 = vmul.f32 %v612_v59, %v1381_v40  ;;  %v628_v6 = vperm.slane %v597_v62, 0  ;;  %v685_v7 = vmul.f32 %v613_v60, %v1379_v39  ;;  %v687_v8 = vmul.f32 %v613_v60, %v1383_v41 }
  0x69   : > { %v629_v9 = vperm.slane %v597_v62, 1  ;;  %v610_v10 = vperm.slane %v576_v0, 0  ;;  %v595_v13 = vrot.slane %v594_v2, 3  ;;  %v611_v1 = vperm.slane %v576_v0, 1 }
  0x6a   : > { %v742_v11 = vpack.c.bf16 %v686_v5, %v684_v4  ;;  %v716_v61 = vmul.f32 %v628_v6, %v1377_v38  ;;  %v718_v12 = vmul.f32 %v628_v6, %v1381_v40  ;;  %v743_v14 = vpack.c.bf16 %v687_v8, %v685_v7 }
  0x6b   : > { %787 = vmatpush.bf16.msra.mxu1 %v760_v63  ;;  %813 = vmatpush.bf16.msra.mxu3 %v761_v3  ;;  %v717_v16 = vmul.f32 %v629_v9, %v1379_v39  ;;  %v719_v17 = vmul.f32 %v629_v9, %v1383_v41  ;;  %v680_v19 = vmul.f32 %v610_v10, %v1377_v38  ;;  %v626_v21 = vperm.slane %v595_v13, 0 }
  0x6c   : > { %775 = vmatpush.bf16.msra.mxu0 %v742_v11  ;;  %v758_v18 = vpack.c.bf16 %v718_v12, %v716_v61  ;;  %v682_v20 = vmul.f32 %v610_v10, %v1381_v40  ;;  %801 = vmatpush.bf16.msra.mxu2 %v743_v14  ;;  %v681_v23 = vmul.f32 %v611_v1, %v1379_v39  ;;  %v627_v25 = vperm.slane %v595_v13, 1 }
  0x6d   : > { %v759_v22 = vpack.c.bf16 %v719_v17, %v717_v16  ;;  %v683_v24 = vmul.f32 %v611_v1, %v1383_v41  ;;  %v712_v27 = vmul.f32 %v626_v21, %v1377_v38  ;;  %v714_v28 = vmul.f32 %v626_v21, %v1381_v40 }
  0x6e   : > { %v740_v26 = vpack.c.bf16 %v682_v20, %v680_v19  ;;  %v713_v30 = vmul.f32 %v627_v25, %v1379_v39  ;;  %v715_v32 = vmul.f32 %v627_v25, %v1383_v41  ;;  %vm568_vm9 = vcmask 1041409  }
  0x6f   : > { %788 = vmatpush.bf16.msra.mxu1 %v758_v18  ;;  %814 = vmatpush.bf16.msra.mxu3 %v759_v22  ;;  %v741_v29 = vpack.c.bf16 %v683_v24, %v681_v23  ;;  %v756_v33 = vpack.c.bf16 %v714_v28, %v712_v27  ;;  %v572_v34 = vsel %vm571_vm8, %v1346_v15, %v1363_v36  ;;  %vm566_vm10 = vcmask 1040384  }
  0x70   : > { %776 = vmatpush.bf16.msra.mxu0 %v740_v26  ;;  %v592_v31 = vsel %vm571_vm8, %v1388_v47, %v1397_v53  ;;  %v569_v35 = vsel %vm568_vm9, %v1346_v15, %v1363_v36  ;;  %v757_v37 = vpack.c.bf16 %v715_v32, %v713_v30  ;;  %v573_v42 = vrot.slane %v572_v34, 2  ;;  %v850_v34 = vld [vmem:[%s1633_s5 + $0x78] sm:$0xff] }
  0x71   : > { %802 = vmatpush.bf16.msra.mxu2 %v741_v29  ;;  %v593_v43 = vrot.slane %v592_v31, 2  ;;  %v570_v45 = vrot.slane %v569_v35, 1  ;;  %v590_v46 = vsel %vm568_vm9, %v1388_v47, %v1397_v53  ;;  %v567_v56 = vsel %vm566_vm10, %v1346_v15, %v1363_v36  ;;  %v768_v35 = vld.sshfl [vmem:[#allocation1] sm:$0xff pattern:$0x73625140] }
  0x72   : > { %v608_v44 = vperm.slane %v573_v42, 0  ;;  %v609_v49 = vperm.slane %v573_v42, 1  ;;  %v591_v52 = vrot.slane %v590_v46, 1  ;;  %v604_v12 = vperm.slane %v567_v56, 0  ;;  %v864_v42 = vld [vmem:[%s1633_s5 + $0xe8] sm:$0xff]  ;;  %v846_v46 = vld [vmem:[%s1633_s5 + $0x58] sm:$0xff] }
  0x73   : > { %789 = vmatpush.bf16.msra.mxu1 %v756_v33  ;;  %815 = vmatpush.bf16.msra.mxu3 %v757_v37  ;;  %v624_v48 = vperm.slane %v593_v43, 0  ;;  %v625_v50 = vperm.slane %v593_v43, 1  ;;  %v606_v51 = vperm.slane %v570_v45, 0  ;;  %v607_v55 = vperm.slane %v570_v45, 1  ;;  %v848_v37 = vld [vmem:[%s1633_s5 + $0x68] sm:$0xff]  ;;  %v847_v43 = vld [vmem:[%s1633_s5 + $0x60] sm:$0xff] }
  0x74   : > { %v676_v57 = vmul.f32 %v608_v44, %v1377_v38  ;;  %v678_v59 = vmul.f32 %v608_v44, %v1381_v40  ;;  %v677_v60 = vmul.f32 %v609_v49, %v1379_v39  ;;  %v679_v0 = vmul.f32 %v609_v49, %v1383_v41  ;;  %v863_v45 = vld [vmem:[%s1633_s5 + $0xe0] sm:$0xff]  ;;  %v862_v44 = vld [vmem:[%s1633_s5 + $0xd8] sm:$0xff]  ;;  %v861_v49 = vld [vmem:[%s1633_s5 + $0xd0] sm:$0xff] }
  0x75   : > { %v708_v62 = vmul.f32 %v624_v48, %v1377_v38  ;;  %v710_v63 = vmul.f32 %v624_v48, %v1381_v40  ;;  %v709_v2 = vmul.f32 %v625_v50, %v1379_v39  ;;  %v711_v3 = vmul.f32 %v625_v50, %v1383_v41  ;;  %v845_v48 = vld [vmem:[%s1633_s5 + $0x50] sm:$0xff]  ;;  %v844_v50 = vld [vmem:[%s1633_s5 + $0x48] sm:$0xff] }
  0x76   : > { %v738_v4 = vpack.c.bf16 %v678_v59, %v676_v57  ;;  %v672_v15 = vmul.f32 %v606_v51, %v1377_v38  ;;  %v674_v36 = vmul.f32 %v606_v51, %v1381_v40  ;;  %v739_v6 = vpack.c.bf16 %v679_v0, %v677_v60  ;;  %v860_v51 = vld [vmem:[%s1633_s5 + $0xc8] sm:$0xff]  ;;  %v858_v57 = vld [vmem:[%s1633_s5 + $0xb8] sm:$0xff]  ;;  %v841_v59 = vld [vmem:[%s1633_s5 + $0x30] sm:$0xff] }
  0x77   : > { %v754_v5 = vpack.c.bf16 %v710_v63, %v708_v62  ;;  %v755_v7 = vpack.c.bf16 %v711_v3, %v709_v2  ;;  %v622_v8 = vperm.slane %v591_v52, 0  ;;  %v673_v9 = vmul.f32 %v607_v55, %v1379_v39  ;;  %v857_v62 = vld [vmem:[%s1633_s5 + $0xb0] sm:$0xff]  ;;  %v840_v63 = vld [vmem:[%s1633_s5 + $0x28] sm:$0xff]  ;;  %v839_v0 = vld [vmem:[%s1633_s5 + $0x20] sm:$0xff] }
  0x78   : > { %777 = vmatpush.bf16.msra.mxu0 %v738_v4  ;;  %v736_v10 = vpack.c.bf16 %v674_v36, %v672_v15  ;;  %v675_v11 = vmul.f32 %v607_v55, %v1383_v41  ;;  %v623_v61 = vperm.slane %v591_v52, 1  ;;  %803 = vmatpush.bf16.msra.mxu2 %v739_v6  ;;  %v589_v16 = vsel %vm566_vm10, %v1388_v47, %v1397_v53  ;;  %v843_v52 = vld [vmem:[%s1633_s5 + $0x40] sm:$0xff]  ;;  %v856_v60 = vld [vmem:[%s1633_s5 + $0xa8] sm:$0xff]  ;;  %v838_v3 = vld [vmem:[%s1633_s5 + $0x18] sm:$0xff] }
  0x79   : > { %790 = vmatpush.bf16.msra.mxu1 %v754_v5  ;;  %816 = vmatpush.bf16.msra.mxu3 %v755_v7  ;;  %v704_v13 = vmul.f32 %v622_v8, %v1377_v38  ;;  %v706_v14 = vmul.f32 %v622_v8, %v1381_v40  ;;  %v605_v17 = vperm.slane %v567_v56, 1  ;;  %v668_v20 = vmul.f32 %v604_v12, %v1377_v38  ;;  %v859_v55 = vld [vmem:[%s1633_s5 + $0xc0] sm:$0xff]  ;;  %v842_v56 = vld [vmem:[%s1633_s5 + $0x38] sm:$0xff]  ;;  %v837_v5 = vld [vmem:[%s1633_s5 + $0x10] sm:$0xff] }
  0x7a   : > { %v737_v1 = vpack.c.bf16 %v675_v11, %v673_v9  ;;  %v705_v18 = vmul.f32 %v623_v61, %v1379_v39  ;;  %v707_v19 = vmul.f32 %v623_v61, %v1383_v41  ;;  %v670_v22 = vmul.f32 %v604_v12, %v1381_v40  ;;  %v855_v2 = vld [vmem:[%s1633_s5 + $0xa0] sm:$0xff]  ;;  %v854_v4 = vld [vmem:[%s1633_s5 + $0x98] sm:$0xff]  ;;  %v853_v15 = vld [vmem:[%s1633_s5 + $0x90] sm:$0xff] }
  0x7b   : > { %v752_v21 = vpack.c.bf16 %v706_v14, %v704_v13  ;;  %v620_v23 = vperm.slane %v589_v16, 0  ;;  %v669_v24 = vmul.f32 %v605_v17, %v1379_v39  ;;  %v671_v26 = vmul.f32 %v605_v17, %v1383_v41  ;;  %v836_v36 = vld [vmem:[%s1633_s5 + $0x8] sm:$0xff]  ;;  %v835_v7 = vld [vmem:[%s1633_s5] sm:$0xff] }
  0x7c   : > { %778 = vmatpush.bf16.msra.mxu0 %v736_v10  ;;  %v753_v25 = vpack.c.bf16 %v707_v19, %v705_v18  ;;  %v621_v27 = vperm.slane %v589_v16, 1  ;;  %804 = vmatpush.bf16.msra.mxu2 %v737_v1  ;;  %v734_v47 = vpack.c.bf16 %v670_v22, %v668_v20  ;;  %v852_v6 = vld [vmem:[%s1633_s5 + $0x88] sm:$0xff]  ;;  %v851_v8 = vld [vmem:[%s1633_s5 + $0x80] sm:$0xff]  ;;  %vm827_vm11 = vcmask 1043456  }
  0x7d   : > { %791 = vmatpush.bf16.msra.mxu1 %v752_v21  ;;  %v700_v53 = vmul.f32 %v620_v23, %v1377_v38  ;;  %v702_v28 = vmul.f32 %v620_v23, %v1381_v40  ;;  %v735_v29 = vpack.c.bf16 %v671_v26, %v669_v24  ;;  %v866_v38 = vld [vmem:[%s1633_s5 + $0xf8] sm:$0xff]  ;;  %v769_v40 = vld.sshfl [vmem:[#allocation1 + $0x8] sm:$0xff pattern:$0x73625140]  ;;  %vm981_vm2 = vcmask 125952  }
  0x7e   : > { %817 = vmatpush.bf16.msra.mxu3 %v753_v25  ;;  %v701_v30 = vmul.f32 %v621_v27, %v1379_v39  ;;  %v703_v32 = vmul.f32 %v621_v27, %v1383_v41  ;;  %v849_v39 = vld [vmem:[%s1633_s5 + $0x70] sm:$0xff] }
  0x7f   : > { %v750_v33 = vpack.c.bf16 %v702_v28, %v700_v53  ;;  %v865_v41 = vld [vmem:[%s1633_s5 + $0xf0] sm:$0xff] }
  0x80   : > { %779 = vmatpush.bf16.msra.mxu0 %v734_v47  ;;  %v751_v31 = vpack.c.bf16 %v703_v32, %v701_v30  ;;  %805 = vmatpush.bf16.msra.mxu2 %v735_v29  ;;  %v1229_v30 = vmov 0  }
  0x81   : > { %792 = vmatpush.bf16.msra.mxu1 %v750_v33 }
  0x82   : > { %818 = vmatpush.bf16.msra.mxu3 %v751_v31 }
  0x83   : > { %780 = vmatmul.bf16.vlgmr.msra.gmra.mxu0 %v768_v35  ;;  %806 = vmatmul.bf16.vlgmr.msra.gmra.mxu2 %v768_v35 }
  0x84   : > { %914 = vmatpush.msrb.mxu2 %v850_v34  ;;  %793 = vmatmul.bf16.vlgmr.msra.gmra.mxu1 %v769_v40 }
  0x85   : > { %819 = vmatmul.bf16.vlgmr.msra.gmra.mxu3 %v769_v40  ;;  %874 = vmatpush.msrb.mxu0 %v850_v34 }
  0x86   : > { %934 = vmatpush.msrb.mxu3 %v866_v38  ;;  %915 = vmatpush.msrb.mxu2 %v849_v39 }
  0x87   : > { %894 = vmatpush.msrb.mxu1 %v866_v38  ;;  %875 = vmatpush.msrb.mxu0 %v849_v39 }
  0x88   : > { %935 = vmatpush.msrb.mxu3 %v865_v41  ;;  %916 = vmatpush.msrb.mxu2 %v848_v37 }
  0x89   : > { %895 = vmatpush.msrb.mxu1 %v865_v41  ;;  %876 = vmatpush.msrb.mxu0 %v848_v37  ;;  %v1159_v41 = vld [vmem:[%s310_s18] ss:$0 sm:$0xff] }
  0x8a   : > { %936 = vmatpush.msrb.mxu3 %v864_v42  ;;  %917 = vmatpush.msrb.mxu2 %v847_v43 }
  0x8b   : > { %896 = vmatpush.msrb.mxu1 %v864_v42  ;;  %877 = vmatpush.msrb.mxu0 %v847_v43 }
  0x8c   : > { %937 = vmatpush.msrb.mxu3 %v863_v45  ;;  %918 = vmatpush.msrb.mxu2 %v846_v46 }
  0x8d   : > { %897 = vmatpush.msrb.mxu1 %v863_v45  ;;  %878 = vmatpush.msrb.mxu0 %v846_v46 }
  0x8e   : > { %938 = vmatpush.msrb.mxu3 %v862_v44  ;;  %919 = vmatpush.msrb.mxu2 %v845_v48 }
  0x8f   : > { %898 = vmatpush.msrb.mxu1 %v862_v44  ;;  %879 = vmatpush.msrb.mxu0 %v845_v48 }
  0x90   : > { %939 = vmatpush.msrb.mxu3 %v861_v49  ;;  %920 = vmatpush.msrb.mxu2 %v844_v50 }
  0x91   : > { %899 = vmatpush.msrb.mxu1 %v861_v49  ;;  %880 = vmatpush.msrb.mxu0 %v844_v50 }
  0x92   : > { %940 = vmatpush.msrb.mxu3 %v860_v51  ;;  %921 = vmatpush.msrb.mxu2 %v843_v52 }
  0x93   : > { %900 = vmatpush.msrb.mxu1 %v860_v51  ;;  %881 = vmatpush.msrb.mxu0 %v843_v52 }
  0x94   : > { %941 = vmatpush.msrb.mxu3 %v859_v55  ;;  %922 = vmatpush.msrb.mxu2 %v842_v56 }
  0x95   : > { %901 = vmatpush.msrb.mxu1 %v859_v55  ;;  %882 = vmatpush.msrb.mxu0 %v842_v56 }
  0x96   : > { %942 = vmatpush.msrb.mxu3 %v858_v57  ;;  %923 = vmatpush.msrb.mxu2 %v841_v59 }
  0x97   : > { %902 = vmatpush.msrb.mxu1 %v858_v57  ;;  %883 = vmatpush.msrb.mxu0 %v841_v59 }
  0x98   : > { %943 = vmatpush.msrb.mxu3 %v857_v62  ;;  %924 = vmatpush.msrb.mxu2 %v840_v63 }
  0x99   : > { %903 = vmatpush.msrb.mxu1 %v857_v62  ;;  %884 = vmatpush.msrb.mxu0 %v840_v63 }
  0x9a   : > { %944 = vmatpush.msrb.mxu3 %v856_v60  ;;  %925 = vmatpush.msrb.mxu2 %v839_v0 }
  0x9b   : > { %904 = vmatpush.msrb.mxu1 %v856_v60  ;;  %885 = vmatpush.msrb.mxu0 %v839_v0 }
  0x9c   : > { %945 = vmatpush.msrb.mxu3 %v855_v2  ;;  %926 = vmatpush.msrb.mxu2 %v838_v3 }
  0x9d   : > { %905 = vmatpush.msrb.mxu1 %v855_v2  ;;  %886 = vmatpush.msrb.mxu0 %v838_v3 }
  0x9e   : > { %946 = vmatpush.msrb.mxu3 %v854_v4  ;;  %927 = vmatpush.msrb.mxu2 %v837_v5 }
  0x9f   : > { %906 = vmatpush.msrb.mxu1 %v854_v4  ;;  %887 = vmatpush.msrb.mxu0 %v837_v5 }
  0xa0   : > { %947 = vmatpush.msrb.mxu3 %v853_v15  ;;  %928 = vmatpush.msrb.mxu2 %v836_v36 }
  0xa1   : > { %907 = vmatpush.msrb.mxu1 %v853_v15  ;;  %888 = vmatpush.msrb.mxu0 %v836_v36 }
  0xa2   : > { %948 = vmatpush.msrb.mxu3 %v852_v6  ;;  %929 = vmatpush.msrb.mxu2 %v835_v7 }
  0xa3   : > { %930 = vmatmul.f32.vlgmr.msrb.gmra.mxu2 %v1312_v54  ;;  %908 = vmatpush.msrb.mxu1 %v852_v6 }
  0xa4   : > { %949 = vmatpush.msrb.mxu3 %v851_v8  ;;  %889 = vmatpush.msrb.mxu0 %v835_v7 }
  0xa5   : > { %950 = vmatmul.f32.vlgmr.msrb.gmra.mxu3 %v1314_v58  ;;  %909 = vmatpush.msrb.mxu1 %v851_v8 }
 0x100   : > { %v781_v9 = vpop.f32.mrf.mxu0 }
 0x101   : > { %v794_v10 = vpop.f32.mrf.mxu1 }
 0x102   : > { %v795_v13 = vadd.f32 %v794_v10, %v781_v9 }
 0x106   : > { %v807_v11 = vpop.f32.mrf.mxu2 }
 0x108   : > { %v820_v61 = vpop.f32.mrf.mxu3  ;;  %v783_v12 = vpop.f32.mrf.mxu0 }
 0x109   : > { %v821_v14 = vadd.f32 %v820_v61, %v807_v11  ;;  %v796_v16 = vpop.f32.mrf.mxu1 }
 0x10b   : > { %v826_v17 = vrot.slane %v821_v14, 4 }
 0x10d   : > { %v828_v1 = vsel %vm827_vm11, %v795_v13, %v826_v17 }
 0x10e   : > { %869 = vst [vmem:[#allocation1] ss:$2 sm:$0xff] %v828_v1  ;;  %v809_v54 = vpop.f32.mrf.mxu2 }
 0x110   : > { %v822_v18 = vpop.f32.mrf.mxu3 }
 0x115   : > { %v870_v58 = vld.sshfl [vmem:[#allocation1] sm:$0xff pattern:$0x75316420]  ;;  %v871_v19 = vld.sshfl [vmem:[#allocation1 + $0x8] sm:$0xff pattern:$0x75316420] }
 0x116   : > { %890 = vmatmul.f32.vlgmr.msrb.gmra.mxu0 %v870_v58  ;;  %910 = vmatmul.f32.vlgmr.msrb.gmra.mxu1 %v871_v19 }
 0x126   : > { %v931_v20 = vpop.f32.mrf.mxu2 }
 0x128   : > { %v951_v21 = vpop.f32.mrf.mxu3 }
 0x129   : > { %v952_v22 = vadd.f32 %v951_v21, %v931_v20 }
 0x12b   : > { %v955_v23 = vmax.f32 %v952_v22, 1.0  ;;  %vm954_vm14 = vcmp.gt.f32.partialorder %v952_v22, 0.0 }
 0x12c   : > { %v972_v32 = vsel %vm954_vm14, 1, %v1229_v30 }
 0x12d   : > { %v956_v24 = vperm.slane %v955_v23, 0  ;;  %v973_v31 = vperm.slane %v972_v32, 0 }
 0x12f   : > { %1164 = vrcp.f32 %v956_v24  ;;  %vm962_vm12 = vweird.f32 %v956_v24  ;;  %v968_v53 = vand.u32 2147483648, %v956_v24  ;;  %v966_v29 = vand.u32 2147483647, %v956_v24 }
 0x130   : > { %vm974_vm1 = vcmp.eq.s32.totalorder %v973_v31, 1 }
 0x131   : > { %v969_v33 = vor.u32 1.1754944e-38, %v968_v53  ;;  %vm967_vm0 = vcmp.eq.f32.partialorder %v966_v29, 8.507059e+37 }
 0x135   : > { %v1165_v25 = vpop.eup %1164 }
 0x136   : > { %v958_v26 = vmul.f32 %v1165_v25, %v956_v24  ;;  %vm963_vm13 = vweird.f32 %v1165_v25 }
 0x137   : > { %vm964_vm15 = vmor %vm962_vm12, %vm963_vm13 }
 0x138   : > { %v959_v27 = vsub.f32 1.0, %v958_v26 }
 0x13a   : > { %v960_v47 = vmul.f32 %v1165_v25, %v959_v27 }
 0x13c   : > { %v961_v28 = vadd.f32 %v1165_v25, %v960_v47 }
 0x13e   : > { %v965_v34 = vsel %vm964_vm15, %v1165_v25, %v961_v28 }
 0x13f   : > { %v970_v39 = vsel %vm967_vm0, %v969_v33, %v965_v34 }
 0x193   : > { %v891_v35 = vpop.f32.mrf.mxu0  ;;  %v911_v38 = vpop.f32.mrf.mxu1 }
 0x194   : > { %v912_v40 = vadd.f32 %v911_v38, %v891_v35 }
 0x196   : > { %v971_v37 = vmul.f32 %v970_v39, %v912_v40 }
 0x198   : > { %v975_v42 = vsel %vm974_vm1, %v971_v37, 0.0 }
 0x199   : > { %v980_v43 = vmul.f32 %v1159_v41, %v975_v42 }
 0x19b   : > { %982 = vst.msk [vmem:[%s314_s23] sm:$0xf] %vm981_vm2, %v980_v43 }
 0x19c PF: > { %s25_s27 = sadd.s32 1, %s1221_s27   ;;  %s1635_s25 = smov %s1217_s26 }
 0x19d   : > { %p22_p9 = scmp.ge.s32.totalorder %s25_s27, 10   ;;  %s1636_s26 = smov %s1638_s28 }
 0x19f   :  { %24 = sbr.rel (!%p22_p9) target bundleno = 8 (0x8), region = 89 }
 0x1a4   :  { %1002 = vsyncpa [#allocation6], 1 }
 0x1a5   :  { %1004 = vsyncpa [#allocation6 + $0x1], 1 }

</bundles_post_ra>
